<compile_context>
chip_gen: v5e
topology: v5e:2x2
jax: 0.10.0
libtpu: 0.0.40
codegen_flags: <defaults>
</compile_context>

<pallas_src>
import functools

import jax
import jax.numpy as jnp
import numpy as np
from jax import lax
from jax.experimental import pallas as pl
from jax.experimental.pallas import tpu as pltpu


# ----------------------------- Pallas kernel ---------------------------------

def _transformer_kernel(x_ref,
                        ln1w_ref, ln1b_ref,
                        wqkv_ref, bqkv_ref,
                        wo_ref, bo_ref,
                        ln2w_ref, ln2b_ref,
                        w1_ref, b1_ref,
                        w2_ref, b2_ref,
                        o_ref,
                        *, n_head: int):
    """One grid step = one ResidualAttentionBlock applied to one batch tile.

    grid = (batch_tiles, layers).  The output block (the activations) stays resident
    in VMEM across the layer axis; the current layer's weights are streamed in via the
    layer grid index (leading layer axis squeezed away by the BlockSpec).
    Matmul inputs are bf16 (f32 accumulation); elementwise math is f32.
    """
    layer = pl.program_id(1)

    # Layer 0: seed the resident activation block from the kernel input.
    @pl.when(layer == 0)
    def _():
        o_ref[...] = x_ref[...]

    x = o_ref[...]                                   # (bn, L, D) f32, VMEM-resident
    bn, L, D = x.shape
    Dh = D // n_head
    rows = bn * L
    # Spec's TF-style LayerNorm default (eps inside the sqrt); NOT PyTorch's 1e-5.
    eps = 1e-12

    ln1w, ln1b = ln1w_ref[...], ln1b_ref[...]        # (1, D) f32
    ln2w, ln2b = ln2w_ref[...], ln2b_ref[...]        # (1, D) f32
    wqkv = wqkv_ref[...]                             # (D, 3D) bf16, (in,out), q pre-scaled
    bqkv = bqkv_ref[...]                             # (1, 3D) f32, q pre-scaled
    wo, bo = wo_ref[...], bo_ref[...]                # (D, D) bf16 / (1, D) f32
    w1, b1 = w1_ref[...], b1_ref[...]                # (D, 4D) bf16 / (1, 4D) f32
    w2, b2 = w2_ref[...], b2_ref[...]                # (4D, D) bf16 / (1, D) f32

    def layer_norm(v, w, b):                         # f32 in / f32 out
        u = jnp.mean(v, axis=-1, keepdims=True)
        s = jnp.mean((v - u) * (v - u), axis=-1, keepdims=True)
        return (v - u) * lax.rsqrt(s + eps) * w + b

    xf = x.reshape(rows, D)                          # (rows, D) f32

    # ---- multi-head self-attention ------------------------------------------
    h1 = layer_norm(xf, ln1w, ln1b)
    # Single bf16 qkv tensor (bias added in f32 accumulation, then one cast).
    qkv = (jnp.dot(h1.astype(jnp.bfloat16), wqkv,
                   preferred_element_type=jnp.float32) + bqkv).astype(jnp.bfloat16)
    q = qkv[:, 0:D].reshape(bn, L, D)                # lane-aligned slices (D % 128 == 0)
    k = qkv[:, D:2 * D].reshape(bn, L, D)
    v = qkv[:, 2 * D:3 * D].reshape(bn, L, D)

    head_ctx = []
    for hh in range(n_head):                         # static, small head loop (see TODO)
        sl = slice(hh * Dh, (hh + 1) * Dh)
        s_ = jnp.einsum('bqd,bkd->bqk', q[..., sl], k[..., sl],
                        preferred_element_type=jnp.float32)         # (bn, L, L) f32
        s_ = s_ - jnp.max(s_, axis=-1, keepdims=True)
        p = jnp.exp(s_)
        # Exact reciprocal: attention-weight error compounds across layers.
        p = p * pl.reciprocal(jnp.sum(p, axis=-1, keepdims=True), approx=False)
        ctx_h = jnp.einsum('bqk,bkd->bqd', p.astype(jnp.bfloat16), v[..., sl],
                           preferred_element_type=jnp.float32)      # (bn, L, Dh) f32
        head_ctx.append(ctx_h.reshape(rows, Dh))
    ctx = jnp.concatenate(head_ctx, axis=-1)         # (rows, D) f32

    attn = jnp.dot(ctx.astype(jnp.bfloat16), wo,
                   preferred_element_type=jnp.float32) + bo
    y = xf + attn                                    # residual 1

    # ---- MLP ------------------------------------------------------------------
    h2 = layer_norm(y, ln2w, ln2b)
    hf = jnp.dot(h2.astype(jnp.bfloat16), w1,
                 preferred_element_type=jnp.float32) + b1           # (rows, 4D) f32
    # QuickGELU: x * sigmoid(1.702 x); approx reciprocal is fine here (EUP slot).
    hf = hf * pl.reciprocal(1.0 + jnp.exp(-1.702 * hf), approx=True)
    m = jnp.dot(hf.astype(jnp.bfloat16), w2,
                preferred_element_type=jnp.float32) + b2            # (rows, D) f32

    o_ref[...] = (y + m).reshape(bn, L, D)           # residual 2, stays resident


# ----------------------------- wrapper / param prep --------------------------

def prepare_params(params, n_head):
    """Stack per-layer PyTorch-layout weights along a leading layer axis, pre-transpose
    matmul weights to (in, out), fold the 1/sqrt(Dh) q-scale into wq/bq, cast to bf16."""
    D = params[0]["wo"].shape[0]
    Dh = D // n_head
    scale = 1.0 / float(np.sqrt(Dh))
    qscale = jnp.asarray(np.concatenate(
        [np.full(D, scale, np.float32), np.ones(2 * D, np.float32)]))

    def stack(key_):
        return jnp.stack([p[key_] for p in params])

    wqkv_t = jnp.stack([p["wqkv"].T for p in params]) * qscale[None, None, :]
    return dict(
        ln1_w=stack("ln1_w"), ln1_b=stack("ln1_b"),
        wqkv=wqkv_t.astype(jnp.bfloat16),
        bqkv=(stack("bqkv") * qscale[None, None, :]).astype(jnp.float32),
        wo=jnp.stack([p["wo"].T for p in params]).astype(jnp.bfloat16),
        bo=stack("bo"),
        ln2_w=stack("ln2_w"), ln2_b=stack("ln2_b"),
        w1=jnp.stack([p["w1"].T for p in params]).astype(jnp.bfloat16),
        b1=stack("b1"),
        w2=jnp.stack([p["w2"].T for p in params]).astype(jnp.bfloat16),
        b2=stack("b2"),
    )


def _is_multi_tensorcore_chip() -> bool:
    """Best-effort detection of chips with 2 TensorCores per chip (v7x-class)."""
    try:
        kind = jax.devices()[0].device_kind.lower()
    except Exception:
        return False
    return ("v7" in kind) or ("7x" in kind)


@functools.partial(jax.jit, static_argnames=("n_head",))
def temporal_transformer(x_lnd, sp, *, n_head):
    """x_lnd: (L, N, D) — PyTorch nn.MultiheadAttention layout.  Returns (L, N, D)."""
    x = jnp.transpose(x_lnd, (1, 0, 2))              # -> (N, L, D) kernel layout
    N, L, D = x.shape
    layers = sp["wqkv"].shape[0]

    # Split the batch into 2 tiles ONLY when the chip has 2 TensorCores (v7x).  On
    # single-TC v5e/v6e a split would re-stream the whole weight stack per batch tile
    # and halve the matmul M for zero parallelism.
    multi_tc = _is_multi_tensorcore_chip()
    num_bt = 2 if (multi_tc and N % 2 == 0 and N >= 2) else 1
    bn = N // num_bt

    # Scoped-VMEM budget: v5e defaults to 16 MiB and v6e to 32 MiB; raise it so full
    # weight blocks stay resident.  Keep under v7x's 64 MiB physical VMEM per TC.
    vmem_limit = (48 if multi_tc else 64) * 1024 * 1024

    xmap = lambda b, l: (b, 0, 0)
    wmap = lambda b, l: (l, 0, 0)
    sq = pl.Squeezed()                               # squeeze the leading layer axis
    in_specs = [
        pl.BlockSpec((bn, L, D), xmap),              # x (read only at layer==0)
        pl.BlockSpec((sq, 1, D), wmap),              # ln1_w
        pl.BlockSpec((sq, 1, D), wmap),              # ln1_b
        pl.BlockSpec((sq, D, 3 * D), wmap),          # wqkv (in, out)
        pl.BlockSpec((sq, 1, 3 * D), wmap),          # bqkv
        pl.BlockSpec((sq, D, D), wmap),              # wo (in, out)
        pl.BlockSpec((sq, 1, D), wmap),              # bo
        pl.BlockSpec((sq, 1, D), wmap),              # ln2_w
        pl.BlockSpec((sq, 1, D), wmap),              # ln2_b
        pl.BlockSpec((sq, D, 4 * D), wmap),          # w1 (in, out)
        pl.BlockSpec((sq, 1, 4 * D), wmap),          # b1
        pl.BlockSpec((sq, 4 * D, D), wmap),          # w2 (in, out)
        pl.BlockSpec((sq, 1, D), wmap),              # b2
    ]

    # Advisory cost estimate so XLA schedules surrounding ops around the fused call.
    rows = N * L
    matmul_flops = 2 * rows * (D * 3 * D + D * D + 2 * 4 * D * D)
    attn_flops = 4 * N * L * L * D                   # scores + context
    flops = layers * (matmul_flops + attn_flops)
    transcendentals = layers * (N * n_head * L * L + rows * 4 * D)
    weight_bytes = 2 * (12 * D * D) + 4 * (13 * D)   # bf16 weights + f32 biases/LN, per layer
    bytes_accessed = layers * weight_bytes * num_bt + 2 * rows * D * 4
    cost = pl.CostEstimate(flops=int(flops), transcendentals=int(transcendentals),
                           bytes_accessed=int(bytes_accessed))

    out = pl.pallas_call(
        functools.partial(_transformer_kernel, n_head=n_head),
        out_shape=jax.ShapeDtypeStruct((N, L, D), jnp.float32),
        grid=(num_bt, layers),
        in_specs=in_specs,
        out_specs=pl.BlockSpec((bn, L, D), xmap),
        compiler_params=pltpu.CompilerParams(
            dimension_semantics=("parallel", "arbitrary"),
            vmem_limit_bytes=vmem_limit),
        cost_estimate=cost,
    )(x, sp["ln1_w"], sp["ln1_b"], sp["wqkv"], sp["bqkv"], sp["wo"], sp["bo"],
      sp["ln2_w"], sp["ln2_b"], sp["w1"], sp["b1"], sp["w2"], sp["b2"])
    return jnp.transpose(out, (1, 0, 2))


# ----------------------------- params & reference ----------------------------

def init_params(key, width, layers):
    """Deterministic synthetic weights matching the nn.Module shapes (PyTorch layout)."""
    d = width
    params = []
    for _ in range(layers):
        key, k0, k1, k2, k3, k4, k5 = jax.random.split(key, 7)
        params.append(dict(
            ln1_w=jnp.ones((1, d), jnp.float32),
            ln1_b=jnp.zeros((1, d), jnp.float32),
            wqkv=0.02 * jax.random.normal(k0, (3 * d, d), jnp.float32),
            bqkv=0.01 * jax.random.normal(k1, (1, 3 * d), jnp.float32),
            wo=0.02 * jax.random.normal(k2, (d, d), jnp.float32),
            bo=jnp.zeros((1, d), jnp.float32),
            ln2_w=jnp.ones((1, d), jnp.float32),
            ln2_b=jnp.zeros((1, d), jnp.float32),
            w1=0.02 * jax.random.normal(k3, (4 * d, d), jnp.float32),
            b1=0.01 * jax.random.normal(k4, (1, 4 * d), jnp.float32),
            w2=0.02 * jax.random.normal(k5, (d, 4 * d), jnp.float32),
            b2=jnp.zeros((1, d), jnp.float32),
        ))
    return params


def _reference_block(x, p, n_head):
    """Pure-JAX f32 reference of one ResidualAttentionBlock. x: (N, L, D)."""
    N, L, D = x.shape
    Dh = D // n_head
    scale = 1.0 / float(np.sqrt(Dh))

    def ln(v, w, b):
        u = v.mean(-1, keepdims=True)
        s = ((v - u) ** 2).mean(-1, keepdims=True)
        return (v - u) / jnp.sqrt(s + 1e-12) * w + b

    h = ln(x, p["ln1_w"], p["ln1_b"])
    qkv = jnp.einsum("nld,ed->nle", h, p["wqkv"]) + p["bqkv"]
    q, k, v = qkv[..., :D], qkv[..., D:2 * D], qkv[..., 2 * D:]
    q = q.reshape(N, L, n_head, Dh)
    k = k.reshape(N, L, n_head, Dh)
    v = v.reshape(N, L, n_head, Dh)
    s_ = jnp.einsum("nqhd,nkhd->nhqk", q, k) * scale
    a = jax.nn.softmax(s_, axis=-1)
    ctx = jnp.einsum("nhqk,nkhd->nqhd", a, v).reshape(N, L, D)
    attn = jnp.einsum("nld,ed->nle", ctx, p["wo"]) + p["bo"]
    x = x + attn
    h2 = ln(x, p["ln2_w"], p["ln2_b"])
    f = jnp.einsum("nld,ed->nle", h2, p["w1"]) + p["b1"]
    f = f * jax.nn.sigmoid(1.702 * f)
    m = jnp.einsum("nle,de->nld", f, p["w2"]) + p["b2"]
    return x + m


def reference_forward(x_lnd, params, n_head):
    x = jnp.transpose(x_lnd, (1, 0, 2))
    for p in params:
        x = _reference_block(x, p, n_head)
    return jnp.transpose(x, (1, 0, 2))


# ----------------------------------- main -------------------------------------

if __name__ == "__main__":
    # TemporalTransformer(width=128, layers=2, heads=4), seq=8, batch=2.
    # Width 128 keeps the demo small but lane-dense (review: D=32 is pure masked-lane
    # overhead; last-dim multiples of 128 are the biggest single lever).
    WIDTH, LAYERS, HEADS = 128, 2, 4
    SEQ, BATCH = 8, 2

    key = jax.random.PRNGKey(0)
    kx, kp = jax.random.split(key)
    x = jax.random.normal(kx, (SEQ, BATCH, WIDTH), jnp.float32)   # (L, N, D)
    params = init_params(kp, WIDTH, LAYERS)
    stacked = prepare_params(params, HEADS)

    out = temporal_transformer(x, stacked, n_head=HEADS)
    out = jax.block_until_ready(out)

    ref = jax.block_until_ready(reference_forward(x, params, HEADS))
    assert out.shape == (SEQ, BATCH, WIDTH)
    # bf16 matmul inputs (f32 accumulation) -> modest tolerance vs the f32 reference.
    np.testing.assert_allclose(np.asarray(out), np.asarray(ref), rtol=2e-2, atol=2e-2)

    print("KERNEL_OK")
</pallas_src>

<mosaic_0001>
module attributes {stable_mosaic.version = 11 : i64} {
  func.func @_transformer_kernel(%arg0: i32, %arg1: i32, %arg2: memref<2x8x128xf32, #tpu.memory_space<vmem>>, %arg3: memref<1x1x128xf32, #tpu.memory_space<vmem>>, %arg4: memref<1x1x128xf32, #tpu.memory_space<vmem>>, %arg5: memref<1x128x384xbf16, #tpu.memory_space<vmem>>, %arg6: memref<1x1x384xf32, #tpu.memory_space<vmem>>, %arg7: memref<1x128x128xbf16, #tpu.memory_space<vmem>>, %arg8: memref<1x1x128xf32, #tpu.memory_space<vmem>>, %arg9: memref<1x1x128xf32, #tpu.memory_space<vmem>>, %arg10: memref<1x1x128xf32, #tpu.memory_space<vmem>>, %arg11: memref<1x128x512xbf16, #tpu.memory_space<vmem>>, %arg12: memref<1x1x512xf32, #tpu.memory_space<vmem>>, %arg13: memref<1x512x128xbf16, #tpu.memory_space<vmem>>, %arg14: memref<1x1x128xf32, #tpu.memory_space<vmem>>, %arg15: memref<2x8x128xf32, #tpu.memory_space<vmem>>) attributes {dimension_semantics = [#tpu.dimension_semantics<parallel>, #tpu.dimension_semantics<arbitrary>], iteration_bounds = array<i64: 1, 2>, scalar_prefetch = 0 : i64, scratch_operands = 0 : i64, tpu.core_type = #tpu.core_type<tc>, window_params = [{transform_indices = @transform_0, window_bounds = array<i64: 2, 8, 128>}, {transform_indices = @transform_1, window_bounds = array<i64: 1, 1, 128>}, {transform_indices = @transform_2, window_bounds = array<i64: 1, 1, 128>}, {transform_indices = @transform_3, window_bounds = array<i64: 1, 128, 384>}, {transform_indices = @transform_4, window_bounds = array<i64: 1, 1, 384>}, {transform_indices = @transform_5, window_bounds = array<i64: 1, 128, 128>}, {transform_indices = @transform_6, window_bounds = array<i64: 1, 1, 128>}, {transform_indices = @transform_7, window_bounds = array<i64: 1, 1, 128>}, {transform_indices = @transform_8, window_bounds = array<i64: 1, 1, 128>}, {transform_indices = @transform_9, window_bounds = array<i64: 1, 128, 512>}, {transform_indices = @transform_10, window_bounds = array<i64: 1, 1, 512>}, {transform_indices = @transform_11, window_bounds = array<i64: 1, 512, 128>}, {transform_indices = @transform_12, window_bounds = array<i64: 1, 1, 128>}, {transform_indices = @transform_13, window_bounds = array<i64: 2, 8, 128>}]} {
    %c0_i32 = arith.constant 0 : i32
    %0 = arith.cmpi eq, %arg1, %c0_i32 : i32
    %1 = arith.extui %0 : i1 to i32
    %c0_i32_0 = arith.constant 0 : i32
    %2 = arith.cmpi ne, %1, %c0_i32_0 : i32
    scf.if %2 {
      %c0_73 = arith.constant 0 : index
      %c0_74 = arith.constant 0 : index
      %c0_75 = arith.constant 0 : index
      %180 = vector.load %arg2[%c0_73, %c0_74, %c0_75] : memref<2x8x128xf32, #tpu.memory_space<vmem>>, vector<2x8x128xf32>
      %c0_76 = arith.constant 0 : index
      %c0_77 = arith.constant 0 : index
      %c0_78 = arith.constant 0 : index
      %181 = vector.load %arg15[%c0_76, %c0_77, %c0_78] : memref<2x8x128xf32, #tpu.memory_space<vmem>>, vector<2x8x128xf32>
      tpu.vector_store %arg15[%c0_76, %c0_77, %c0_78], %180 {strides = array<i32>} : memref<2x8x128xf32, #tpu.memory_space<vmem>>, vector<2x8x128xf32>,
    } else {
    }
    %c0 = arith.constant 0 : index
    %c0_1 = arith.constant 0 : index
    %c0_2 = arith.constant 0 : index
    %3 = vector.load %arg15[%c0, %c0_1, %c0_2] : memref<2x8x128xf32, #tpu.memory_space<vmem>>, vector<2x8x128xf32>
    %c0_3 = arith.constant 0 : index
    %c0_4 = arith.constant 0 : index
    %c0_5 = arith.constant 0 : index
    %4 = vector.load %arg3[%c0_3, %c0_4, %c0_5] : memref<1x1x128xf32, #tpu.memory_space<vmem>>, vector<1x1x128xf32>
    %5 = vector.shape_cast %4 : vector<1x1x128xf32> to vector<1x128xf32>
    %c0_6 = arith.constant 0 : index
    %c0_7 = arith.constant 0 : index
    %c0_8 = arith.constant 0 : index
    %6 = vector.load %arg4[%c0_6, %c0_7, %c0_8] : memref<1x1x128xf32, #tpu.memory_space<vmem>>, vector<1x1x128xf32>
    %7 = vector.shape_cast %6 : vector<1x1x128xf32> to vector<1x128xf32>
    %c0_9 = arith.constant 0 : index
    %c0_10 = arith.constant 0 : index
    %c0_11 = arith.constant 0 : index
    %8 = vector.load %arg9[%c0_9, %c0_10, %c0_11] : memref<1x1x128xf32, #tpu.memory_space<vmem>>, vector<1x1x128xf32>
    %9 = vector.shape_cast %8 : vector<1x1x128xf32> to vector<1x128xf32>
    %c0_12 = arith.constant 0 : index
    %c0_13 = arith.constant 0 : index
    %c0_14 = arith.constant 0 : index
    %10 = vector.load %arg10[%c0_12, %c0_13, %c0_14] : memref<1x1x128xf32, #tpu.memory_space<vmem>>, vector<1x1x128xf32>
    %11 = vector.shape_cast %10 : vector<1x1x128xf32> to vector<1x128xf32>
    %c0_15 = arith.constant 0 : index
    %c0_16 = arith.constant 0 : index
    %c0_17 = arith.constant 0 : index
    %12 = vector.load %arg5[%c0_15, %c0_16, %c0_17] : memref<1x128x384xbf16, #tpu.memory_space<vmem>>, vector<1x128x384xbf16>
    %13 = vector.shape_cast %12 : vector<1x128x384xbf16> to vector<128x384xbf16>
    %c0_18 = arith.constant 0 : index
    %c0_19 = arith.constant 0 : index
    %c0_20 = arith.constant 0 : index
    %14 = vector.load %arg6[%c0_18, %c0_19, %c0_20] : memref<1x1x384xf32, #tpu.memory_space<vmem>>, vector<1x1x384xf32>
    %15 = vector.shape_cast %14 : vector<1x1x384xf32> to vector<1x384xf32>
    %c0_21 = arith.constant 0 : index
    %c0_22 = arith.constant 0 : index
    %c0_23 = arith.constant 0 : index
    %16 = vector.load %arg7[%c0_21, %c0_22, %c0_23] : memref<1x128x128xbf16, #tpu.memory_space<vmem>>, vector<1x128x128xbf16>
    %17 = vector.shape_cast %16 : vector<1x128x128xbf16> to vector<128x128xbf16>
    %c0_24 = arith.constant 0 : index
    %c0_25 = arith.constant 0 : index
    %c0_26 = arith.constant 0 : index
    %18 = vector.load %arg8[%c0_24, %c0_25, %c0_26] : memref<1x1x128xf32, #tpu.memory_space<vmem>>, vector<1x1x128xf32>
    %19 = vector.shape_cast %18 : vector<1x1x128xf32> to vector<1x128xf32>
    %c0_27 = arith.constant 0 : index
    %c0_28 = arith.constant 0 : index
    %c0_29 = arith.constant 0 : index
    %20 = vector.load %arg11[%c0_27, %c0_28, %c0_29] : memref<1x128x512xbf16, #tpu.memory_space<vmem>>, vector<1x128x512xbf16>
    %21 = vector.shape_cast %20 : vector<1x128x512xbf16> to vector<128x512xbf16>
    %c0_30 = arith.constant 0 : index
    %c0_31 = arith.constant 0 : index
    %c0_32 = arith.constant 0 : index
    %22 = vector.load %arg12[%c0_30, %c0_31, %c0_32] : memref<1x1x512xf32, #tpu.memory_space<vmem>>, vector<1x1x512xf32>
    %23 = vector.shape_cast %22 : vector<1x1x512xf32> to vector<1x512xf32>
    %c0_33 = arith.constant 0 : index
    %c0_34 = arith.constant 0 : index
    %c0_35 = arith.constant 0 : index
    %24 = vector.load %arg13[%c0_33, %c0_34, %c0_35] : memref<1x512x128xbf16, #tpu.memory_space<vmem>>, vector<1x512x128xbf16>
    %25 = vector.shape_cast %24 : vector<1x512x128xbf16> to vector<512x128xbf16>
    %c0_36 = arith.constant 0 : index
    %c0_37 = arith.constant 0 : index
    %c0_38 = arith.constant 0 : index
    %26 = vector.load %arg14[%c0_36, %c0_37, %c0_38] : memref<1x1x128xf32, #tpu.memory_space<vmem>>, vector<1x1x128xf32>
    %27 = vector.shape_cast %26 : vector<1x1x128xf32> to vector<1x128xf32>
    %28 = vector.shape_cast %3 : vector<2x8x128xf32> to vector<16x128xf32>
    %cst = arith.constant dense<0.000000e+00> : vector<16xf32>
    %29 = vector.multi_reduction <add>, %28, %cst [1] : vector<16x128xf32> to vector<16xf32>
    %30 = vector.shape_cast %29 : vector<16xf32> to vector<16x1xf32>
    %cst_39 = arith.constant 1.280000e+02 : f32
    %31 = vector.broadcast %cst_39 : f32 to vector<16x1xf32>
    %32 = arith.divf %30, %31 : vector<16x1xf32>
    %33 = vector.broadcast %32 : vector<16x1xf32> to vector<16x128xf32>
    %34 = arith.subf %28, %33 : vector<16x128xf32>
    %35 = vector.broadcast %32 : vector<16x1xf32> to vector<16x128xf32>
    %36 = arith.subf %28, %35 : vector<16x128xf32>
    %37 = arith.mulf %34, %36 : vector<16x128xf32>
    %cst_40 = arith.constant dense<0.000000e+00> : vector<16xf32>
    %38 = vector.multi_reduction <add>, %37, %cst_40 [1] : vector<16x128xf32> to vector<16xf32>
    %39 = vector.shape_cast %38 : vector<16xf32> to vector<16x1xf32>
    %cst_41 = arith.constant 1.280000e+02 : f32
    %40 = vector.broadcast %cst_41 : f32 to vector<16x1xf32>
    %41 = arith.divf %39, %40 : vector<16x1xf32>
    %42 = vector.broadcast %32 : vector<16x1xf32> to vector<16x128xf32>
    %43 = arith.subf %28, %42 : vector<16x128xf32>
    %cst_42 = arith.constant 9.99999996E-13 : f32
    %44 = vector.broadcast %cst_42 : f32 to vector<16x1xf32>
    %45 = arith.addf %41, %44 : vector<16x1xf32>
    %46 = math.rsqrt %45 : vector<16x1xf32>
    %47 = vector.broadcast %46 : vector<16x1xf32> to vector<16x128xf32>
    %48 = arith.mulf %43, %47 : vector<16x128xf32>
    %49 = vector.broadcast %5 : vector<1x128xf32> to vector<16x128xf32>
    %50 = arith.mulf %48, %49 : vector<16x128xf32>
    %51 = vector.broadcast %7 : vector<1x128xf32> to vector<16x128xf32>
    %52 = arith.addf %50, %51 : vector<16x128xf32>
    %53 = arith.truncf %52 : vector<16x128xf32> to vector<16x128xbf16>
    %cst_43 = arith.constant dense<0.000000e+00> : vector<16x384xf32>
    %54 = tpu.matmul %53, %13, %cst_43 {dimension_numbers = #tpu.dot_dimension_numbers<[1], [0], [0], [1], [0, 0, 1, 1], [], []>} : vector<16x128xbf16>, vector<128x384xbf16>, vector<16x384xf32> -> vector<16x384xf32>
    %55 = vector.broadcast %15 : vector<1x384xf32> to vector<16x384xf32>
    %56 = arith.addf %54, %55 : vector<16x384xf32>
    %57 = arith.truncf %56 : vector<16x384xf32> to vector<16x384xbf16>
    %58 = vector.extract_strided_slice %57 {offsets = [0, 0], sizes = [16, 128], strides = [1, 1]} : vector<16x384xbf16> to vector<16x128xbf16>
    %59 = vector.shape_cast %58 : vector<16x128xbf16> to vector<2x8x128xbf16>
    %60 = vector.extract_strided_slice %57 {offsets = [0, 128], sizes = [16, 128], strides = [1, 1]} : vector<16x384xbf16> to vector<16x128xbf16>
    %61 = vector.shape_cast %60 : vector<16x128xbf16> to vector<2x8x128xbf16>
    %62 = vector.extract_strided_slice %57 {offsets = [0, 256], sizes = [16, 128], strides = [1, 1]} : vector<16x384xbf16> to vector<16x128xbf16>
    %63 = vector.shape_cast %62 : vector<16x128xbf16> to vector<2x8x128xbf16>
    %64 = vector.extract_strided_slice %59 {offsets = [0, 0, 0], sizes = [2, 8, 32], strides = [1, 1, 1]} : vector<2x8x128xbf16> to vector<2x8x32xbf16>
    %65 = vector.extract_strided_slice %61 {offsets = [0, 0, 0], sizes = [2, 8, 32], strides = [1, 1, 1]} : vector<2x8x128xbf16> to vector<2x8x32xbf16>
    "tpu.trace_start"() <{level = 10 : i32, message = "bqd,bkd->bqk"}> : () -> ()
    %cst_44 = arith.constant dense<0.000000e+00> : vector<2x8x8xf32>
    %66 = tpu.matmul %64, %65, %cst_44 {dimension_numbers = #tpu.dot_dimension_numbers<[2], [2], [1], [1], [0, 0, 0, 1, 1, 1], [0], [0]>} : vector<2x8x32xbf16>, vector<2x8x32xbf16>, vector<2x8x8xf32> -> vector<2x8x8xf32>
    "tpu.trace_stop"() : () -> ()
    %cst_45 = arith.constant dense<0xFF800000> : vector<2x8xf32>
    %67 = vector.multi_reduction <maximumf>, %66, %cst_45 [2] : vector<2x8x8xf32> to vector<2x8xf32>
    %68 = vector.shape_cast %67 : vector<2x8xf32> to vector<2x8x1xf32>
    %69 = vector.broadcast %68 : vector<2x8x1xf32> to vector<2x8x8xf32>
    %70 = arith.subf %66, %69 : vector<2x8x8xf32>
    %71 = math.exp %70 : vector<2x8x8xf32>
    %cst_46 = arith.constant dense<0.000000e+00> : vector<2x8xf32>
    %72 = vector.multi_reduction <add>, %71, %cst_46 [2] : vector<2x8x8xf32> to vector<2x8xf32>
    %73 = vector.shape_cast %72 : vector<2x8xf32> to vector<2x8x1xf32>
    %74 = tpu.reciprocal %73 : vector<2x8x1xf32> -> vector<2x8x1xf32>
    %75 = vector.broadcast %74 : vector<2x8x1xf32> to vector<2x8x8xf32>
    %76 = arith.mulf %71, %75 : vector<2x8x8xf32>
    %77 = arith.truncf %76 : vector<2x8x8xf32> to vector<2x8x8xbf16>
    %78 = vector.extract_strided_slice %63 {offsets = [0, 0, 0], sizes = [2, 8, 32], strides = [1, 1, 1]} : vector<2x8x128xbf16> to vector<2x8x32xbf16>
    "tpu.trace_start"() <{level = 10 : i32, message = "bqk,bkd->bqd"}> : () -> ()
    %cst_47 = arith.constant dense<0.000000e+00> : vector<2x8x32xf32>
    %79 = tpu.matmul %77, %78, %cst_47 {dimension_numbers = #tpu.dot_dimension_numbers<[2], [1], [1], [2], [0, 0, 0, 1, 1, 2], [0], [0]>} : vector<2x8x8xbf16>, vector<2x8x32xbf16>, vector<2x8x32xf32> -> vector<2x8x32xf32>
    "tpu.trace_stop"() : () -> ()
    %80 = vector.shape_cast %79 : vector<2x8x32xf32> to vector<16x32xf32>
    %81 = vector.extract_strided_slice %59 {offsets = [0, 0, 32], sizes = [2, 8, 32], strides = [1, 1, 1]} : vector<2x8x128xbf16> to vector<2x8x32xbf16>
    %82 = vector.extract_strided_slice %61 {offsets = [0, 0, 32], sizes = [2, 8, 32], strides = [1, 1, 1]} : vector<2x8x128xbf16> to vector<2x8x32xbf16>
    "tpu.trace_start"() <{level = 10 : i32, message = "bqd,bkd->bqk"}> : () -> ()
    %cst_48 = arith.constant dense<0.000000e+00> : vector<2x8x8xf32>
    %83 = tpu.matmul %81, %82, %cst_48 {dimension_numbers = #tpu.dot_dimension_numbers<[2], [2], [1], [1], [0, 0, 0, 1, 1, 1], [0], [0]>} : vector<2x8x32xbf16>, vector<2x8x32xbf16>, vector<2x8x8xf32> -> vector<2x8x8xf32>
    "tpu.trace_stop"() : () -> ()
    %cst_49 = arith.constant dense<0xFF800000> : vector<2x8xf32>
    %84 = vector.multi_reduction <maximumf>, %83, %cst_49 [2] : vector<2x8x8xf32> to vector<2x8xf32>
    %85 = vector.shape_cast %84 : vector<2x8xf32> to vector<2x8x1xf32>
    %86 = vector.broadcast %85 : vector<2x8x1xf32> to vector<2x8x8xf32>
    %87 = arith.subf %83, %86 : vector<2x8x8xf32>
    %88 = math.exp %87 : vector<2x8x8xf32>
    %cst_50 = arith.constant dense<0.000000e+00> : vector<2x8xf32>
    %89 = vector.multi_reduction <add>, %88, %cst_50 [2] : vector<2x8x8xf32> to vector<2x8xf32>
    %90 = vector.shape_cast %89 : vector<2x8xf32> to vector<2x8x1xf32>
    %91 = tpu.reciprocal %90 : vector<2x8x1xf32> -> vector<2x8x1xf32>
    %92 = vector.broadcast %91 : vector<2x8x1xf32> to vector<2x8x8xf32>
    %93 = arith.mulf %88, %92 : vector<2x8x8xf32>
    %94 = arith.truncf %93 : vector<2x8x8xf32> to vector<2x8x8xbf16>
    %95 = vector.extract_strided_slice %63 {offsets = [0, 0, 32], sizes = [2, 8, 32], strides = [1, 1, 1]} : vector<2x8x128xbf16> to vector<2x8x32xbf16>
    "tpu.trace_start"() <{level = 10 : i32, message = "bqk,bkd->bqd"}> : () -> ()
    %cst_51 = arith.constant dense<0.000000e+00> : vector<2x8x32xf32>
    %96 = tpu.matmul %94, %95, %cst_51 {dimension_numbers = #tpu.dot_dimension_numbers<[2], [1], [1], [2], [0, 0, 0, 1, 1, 2], [0], [0]>} : vector<2x8x8xbf16>, vector<2x8x32xbf16>, vector<2x8x32xf32> -> vector<2x8x32xf32>
    "tpu.trace_stop"() : () -> ()
    %97 = vector.shape_cast %96 : vector<2x8x32xf32> to vector<16x32xf32>
    %98 = vector.extract_strided_slice %59 {offsets = [0, 0, 64], sizes = [2, 8, 32], strides = [1, 1, 1]} : vector<2x8x128xbf16> to vector<2x8x32xbf16>
    %99 = vector.extract_strided_slice %61 {offsets = [0, 0, 64], sizes = [2, 8, 32], strides = [1, 1, 1]} : vector<2x8x128xbf16> to vector<2x8x32xbf16>
    "tpu.trace_start"() <{level = 10 : i32, message = "bqd,bkd->bqk"}> : () -> ()
    %cst_52 = arith.constant dense<0.000000e+00> : vector<2x8x8xf32>
    %100 = tpu.matmul %98, %99, %cst_52 {dimension_numbers = #tpu.dot_dimension_numbers<[2], [2], [1], [1], [0, 0, 0, 1, 1, 1], [0], [0]>} : vector<2x8x32xbf16>, vector<2x8x32xbf16>, vector<2x8x8xf32> -> vector<2x8x8xf32>
    "tpu.trace_stop"() : () -> ()
    %cst_53 = arith.constant dense<0xFF800000> : vector<2x8xf32>
    %101 = vector.multi_reduction <maximumf>, %100, %cst_53 [2] : vector<2x8x8xf32> to vector<2x8xf32>
    %102 = vector.shape_cast %101 : vector<2x8xf32> to vector<2x8x1xf32>
    %103 = vector.broadcast %102 : vector<2x8x1xf32> to vector<2x8x8xf32>
    %104 = arith.subf %100, %103 : vector<2x8x8xf32>
    %105 = math.exp %104 : vector<2x8x8xf32>
    %cst_54 = arith.constant dense<0.000000e+00> : vector<2x8xf32>
    %106 = vector.multi_reduction <add>, %105, %cst_54 [2] : vector<2x8x8xf32> to vector<2x8xf32>
    %107 = vector.shape_cast %106 : vector<2x8xf32> to vector<2x8x1xf32>
    %108 = tpu.reciprocal %107 : vector<2x8x1xf32> -> vector<2x8x1xf32>
    %109 = vector.broadcast %108 : vector<2x8x1xf32> to vector<2x8x8xf32>
    %110 = arith.mulf %105, %109 : vector<2x8x8xf32>
    %111 = arith.truncf %110 : vector<2x8x8xf32> to vector<2x8x8xbf16>
    %112 = vector.extract_strided_slice %63 {offsets = [0, 0, 64], sizes = [2, 8, 32], strides = [1, 1, 1]} : vector<2x8x128xbf16> to vector<2x8x32xbf16>
    "tpu.trace_start"() <{level = 10 : i32, message = "bqk,bkd->bqd"}> : () -> ()
    %cst_55 = arith.constant dense<0.000000e+00> : vector<2x8x32xf32>
    %113 = tpu.matmul %111, %112, %cst_55 {dimension_numbers = #tpu.dot_dimension_numbers<[2], [1], [1], [2], [0, 0, 0, 1, 1, 2], [0], [0]>} : vector<2x8x8xbf16>, vector<2x8x32xbf16>, vector<2x8x32xf32> -> vector<2x8x32xf32>
    "tpu.trace_stop"() : () -> ()
    %114 = vector.shape_cast %113 : vector<2x8x32xf32> to vector<16x32xf32>
    %115 = vector.extract_strided_slice %59 {offsets = [0, 0, 96], sizes = [2, 8, 32], strides = [1, 1, 1]} : vector<2x8x128xbf16> to vector<2x8x32xbf16>
    %116 = vector.extract_strided_slice %61 {offsets = [0, 0, 96], sizes = [2, 8, 32], strides = [1, 1, 1]} : vector<2x8x128xbf16> to vector<2x8x32xbf16>
    "tpu.trace_start"() <{level = 10 : i32, message = "bqd,bkd->bqk"}> : () -> ()
    %cst_56 = arith.constant dense<0.000000e+00> : vector<2x8x8xf32>
    %117 = tpu.matmul %115, %116, %cst_56 {dimension_numbers = #tpu.dot_dimension_numbers<[2], [2], [1], [1], [0, 0, 0, 1, 1, 1], [0], [0]>} : vector<2x8x32xbf16>, vector<2x8x32xbf16>, vector<2x8x8xf32> -> vector<2x8x8xf32>
    "tpu.trace_stop"() : () -> ()
    %cst_57 = arith.constant dense<0xFF800000> : vector<2x8xf32>
    %118 = vector.multi_reduction <maximumf>, %117, %cst_57 [2] : vector<2x8x8xf32> to vector<2x8xf32>
    %119 = vector.shape_cast %118 : vector<2x8xf32> to vector<2x8x1xf32>
    %120 = vector.broadcast %119 : vector<2x8x1xf32> to vector<2x8x8xf32>
    %121 = arith.subf %117, %120 : vector<2x8x8xf32>
    %122 = math.exp %121 : vector<2x8x8xf32>
    %cst_58 = arith.constant dense<0.000000e+00> : vector<2x8xf32>
    %123 = vector.multi_reduction <add>, %122, %cst_58 [2] : vector<2x8x8xf32> to vector<2x8xf32>
    %124 = vector.shape_cast %123 : vector<2x8xf32> to vector<2x8x1xf32>
    %125 = tpu.reciprocal %124 : vector<2x8x1xf32> -> vector<2x8x1xf32>
    %126 = vector.broadcast %125 : vector<2x8x1xf32> to vector<2x8x8xf32>
    %127 = arith.mulf %122, %126 : vector<2x8x8xf32>
    %128 = arith.truncf %127 : vector<2x8x8xf32> to vector<2x8x8xbf16>
    %129 = vector.extract_strided_slice %63 {offsets = [0, 0, 96], sizes = [2, 8, 32], strides = [1, 1, 1]} : vector<2x8x128xbf16> to vector<2x8x32xbf16>
    "tpu.trace_start"() <{level = 10 : i32, message = "bqk,bkd->bqd"}> : () -> ()
    %cst_59 = arith.constant dense<0.000000e+00> : vector<2x8x32xf32>
    %130 = tpu.matmul %128, %129, %cst_59 {dimension_numbers = #tpu.dot_dimension_numbers<[2], [1], [1], [2], [0, 0, 0, 1, 1, 2], [0], [0]>} : vector<2x8x8xbf16>, vector<2x8x32xbf16>, vector<2x8x32xf32> -> vector<2x8x32xf32>
    "tpu.trace_stop"() : () -> ()
    %131 = vector.shape_cast %130 : vector<2x8x32xf32> to vector<16x32xf32>
    %132 = tpu.concatenate %80, %97, %114, %131 in 1 : vector<16x32xf32>, vector<16x32xf32>, vector<16x32xf32>, vector<16x32xf32> -> vector<16x128xf32>
    %133 = arith.truncf %132 : vector<16x128xf32> to vector<16x128xbf16>
    %cst_60 = arith.constant dense<0.000000e+00> : vector<16x128xf32>
    %134 = tpu.matmul %133, %17, %cst_60 {dimension_numbers = #tpu.dot_dimension_numbers<[1], [0], [0], [1], [0, 0, 1, 1], [], []>} : vector<16x128xbf16>, vector<128x128xbf16>, vector<16x128xf32> -> vector<16x128xf32>
    %135 = vector.broadcast %19 : vector<1x128xf32> to vector<16x128xf32>
    %136 = arith.addf %134, %135 : vector<16x128xf32>
    %137 = arith.addf %28, %136 : vector<16x128xf32>
    %cst_61 = arith.constant dense<0.000000e+00> : vector<16xf32>
    %138 = vector.multi_reduction <add>, %137, %cst_61 [1] : vector<16x128xf32> to vector<16xf32>
    %139 = vector.shape_cast %138 : vector<16xf32> to vector<16x1xf32>
    %cst_62 = arith.constant 1.280000e+02 : f32
    %140 = vector.broadcast %cst_62 : f32 to vector<16x1xf32>
    %141 = arith.divf %139, %140 : vector<16x1xf32>
    %142 = vector.broadcast %141 : vector<16x1xf32> to vector<16x128xf32>
    %143 = arith.subf %137, %142 : vector<16x128xf32>
    %144 = vector.broadcast %141 : vector<16x1xf32> to vector<16x128xf32>
    %145 = arith.subf %137, %144 : vector<16x128xf32>
    %146 = arith.mulf %143, %145 : vector<16x128xf32>
    %cst_63 = arith.constant dense<0.000000e+00> : vector<16xf32>
    %147 = vector.multi_reduction <add>, %146, %cst_63 [1] : vector<16x128xf32> to vector<16xf32>
    %148 = vector.shape_cast %147 : vector<16xf32> to vector<16x1xf32>
    %cst_64 = arith.constant 1.280000e+02 : f32
    %149 = vector.broadcast %cst_64 : f32 to vector<16x1xf32>
    %150 = arith.divf %148, %149 : vector<16x1xf32>
    %151 = vector.broadcast %141 : vector<16x1xf32> to vector<16x128xf32>
    %152 = arith.subf %137, %151 : vector<16x128xf32>
    %cst_65 = arith.constant 9.99999996E-13 : f32
    %153 = vector.broadcast %cst_65 : f32 to vector<16x1xf32>
    %154 = arith.addf %150, %153 : vector<16x1xf32>
    %155 = math.rsqrt %154 : vector<16x1xf32>
    %156 = vector.broadcast %155 : vector<16x1xf32> to vector<16x128xf32>
    %157 = arith.mulf %152, %156 : vector<16x128xf32>
    %158 = vector.broadcast %9 : vector<1x128xf32> to vector<16x128xf32>
    %159 = arith.mulf %157, %158 : vector<16x128xf32>
    %160 = vector.broadcast %11 : vector<1x128xf32> to vector<16x128xf32>
    %161 = arith.addf %159, %160 : vector<16x128xf32>
    %162 = arith.truncf %161 : vector<16x128xf32> to vector<16x128xbf16>
    %cst_66 = arith.constant dense<0.000000e+00> : vector<16x512xf32>
    %163 = tpu.matmul %162, %21, %cst_66 {dimension_numbers = #tpu.dot_dimension_numbers<[1], [0], [0], [1], [0, 0, 1, 1], [], []>} : vector<16x128xbf16>, vector<128x512xbf16>, vector<16x512xf32> -> vector<16x512xf32>
    %164 = vector.broadcast %23 : vector<1x512xf32> to vector<16x512xf32>
    %165 = arith.addf %163, %164 : vector<16x512xf32>
    %cst_67 = arith.constant -1.702000e+00 : f32
    %166 = vector.broadcast %cst_67 : f32 to vector<16x512xf32>
    %167 = arith.mulf %166, %165 : vector<16x512xf32>
    %168 = math.exp %167 : vector<16x512xf32>
    %cst_68 = arith.constant 1.000000e+00 : f32
    %169 = vector.broadcast %cst_68 : f32 to vector<16x512xf32>
    %170 = arith.addf %169, %168 : vector<16x512xf32>
    %171 = tpu.reciprocal %170 {approx = true} : vector<16x512xf32> -> vector<16x512xf32>
    %172 = arith.mulf %165, %171 : vector<16x512xf32>
    %173 = arith.truncf %172 : vector<16x512xf32> to vector<16x512xbf16>
    %cst_69 = arith.constant dense<0.000000e+00> : vector<16x128xf32>
    %174 = tpu.matmul %173, %25, %cst_69 {dimension_numbers = #tpu.dot_dimension_numbers<[1], [0], [0], [1], [0, 0, 1, 1], [], []>} : vector<16x512xbf16>, vector<512x128xbf16>, vector<16x128xf32> -> vector<16x128xf32>
    %175 = vector.broadcast %27 : vector<1x128xf32> to vector<16x128xf32>
    %176 = arith.addf %174, %175 : vector<16x128xf32>
    %177 = arith.addf %137, %176 : vector<16x128xf32>
    %178 = vector.shape_cast %177 : vector<16x128xf32> to vector<2x8x128xf32>
    %c0_70 = arith.constant 0 : index
    %c0_71 = arith.constant 0 : index
    %c0_72 = arith.constant 0 : index
    %179 = vector.load %arg15[%c0_70, %c0_71, %c0_72] : memref<2x8x128xf32, #tpu.memory_space<vmem>>, vector<2x8x128xf32>
    tpu.vector_store %arg15[%c0_70, %c0_71, %c0_72], %178 {strides = array<i32>} : memref<2x8x128xf32, #tpu.memory_space<vmem>>, vector<2x8x128xf32>,
    return
  }
  func.func @transform_0(%arg0: i32, %arg1: i32) -> (i32, i32, i32) {
    %c0_i32 = arith.constant 0 : i32
    %c0_i32_0 = arith.constant 0 : i32
    %c0_i32_1 = arith.constant 0 : i32
    return %arg0, %c0_i32, %c0_i32_0 : i32, i32, i32
  }
  func.func @transform_1(%arg0: i32, %arg1: i32) -> (i32, i32, i32) {
    %c0_i32 = arith.constant 0 : i32
    %c0_i32_0 = arith.constant 0 : i32
    %c0_i32_1 = arith.constant 0 : i32
    return %arg1, %c0_i32, %c0_i32_0 : i32, i32, i32
  }
  func.func @transform_2(%arg0: i32, %arg1: i32) -> (i32, i32, i32) {
    %c0_i32 = arith.constant 0 : i32
    %c0_i32_0 = arith.constant 0 : i32
    %c0_i32_1 = arith.constant 0 : i32
    return %arg1, %c0_i32, %c0_i32_0 : i32, i32, i32
  }
  func.func @transform_3(%arg0: i32, %arg1: i32) -> (i32, i32, i32) {
    %c0_i32 = arith.constant 0 : i32
    %c0_i32_0 = arith.constant 0 : i32
    %c0_i32_1 = arith.constant 0 : i32
    return %arg1, %c0_i32, %c0_i32_0 : i32, i32, i32
  }
  func.func @transform_4(%arg0: i32, %arg1: i32) -> (i32, i32, i32) {
    %c0_i32 = arith.constant 0 : i32
    %c0_i32_0 = arith.constant 0 : i32
    %c0_i32_1 = arith.constant 0 : i32
    return %arg1, %c0_i32, %c0_i32_0 : i32, i32, i32
  }
  func.func @transform_5(%arg0: i32, %arg1: i32) -> (i32, i32, i32) {
    %c0_i32 = arith.constant 0 : i32
    %c0_i32_0 = arith.constant 0 : i32
    %c0_i32_1 = arith.constant 0 : i32
    return %arg1, %c0_i32, %c0_i32_0 : i32, i32, i32
  }
  func.func @transform_6(%arg0: i32, %arg1: i32) -> (i32, i32, i32) {
    %c0_i32 = arith.constant 0 : i32
    %c0_i32_0 = arith.constant 0 : i32
    %c0_i32_1 = arith.constant 0 : i32
    return %arg1, %c0_i32, %c0_i32_0 : i32, i32, i32
  }
  func.func @transform_7(%arg0: i32, %arg1: i32) -> (i32, i32, i32) {
    %c0_i32 = arith.constant 0 : i32
    %c0_i32_0 = arith.constant 0 : i32
    %c0_i32_1 = arith.constant 0 : i32
    return %arg1, %c0_i32, %c0_i32_0 : i32, i32, i32
  }
  func.func @transform_8(%arg0: i32, %arg1: i32) -> (i32, i32, i32) {
    %c0_i32 = arith.constant 0 : i32
    %c0_i32_0 = arith.constant 0 : i32
    %c0_i32_1 = arith.constant 0 : i32
    return %arg1, %c0_i32, %c0_i32_0 : i32, i32, i32
  }
  func.func @transform_9(%arg0: i32, %arg1: i32) -> (i32, i32, i32) {
    %c0_i32 = arith.constant 0 : i32
    %c0_i32_0 = arith.constant 0 : i32
    %c0_i32_1 = arith.constant 0 : i32
    return %arg1, %c0_i32, %c0_i32_0 : i32, i32, i32
  }
  func.func @transform_10(%arg0: i32, %arg1: i32) -> (i32, i32, i32) {
    %c0_i32 = arith.constant 0 : i32
    %c0_i32_0 = arith.constant 0 : i32
    %c0_i32_1 = arith.constant 0 : i32
    return %arg1, %c0_i32, %c0_i32_0 : i32, i32, i32
  }
  func.func @transform_11(%arg0: i32, %arg1: i32) -> (i32, i32, i32) {
    %c0_i32 = arith.constant 0 : i32
    %c0_i32_0 = arith.constant 0 : i32
    %c0_i32_1 = arith.constant 0 : i32
    return %arg1, %c0_i32, %c0_i32_0 : i32, i32, i32
  }
  func.func @transform_12(%arg0: i32, %arg1: i32) -> (i32, i32, i32) {
    %c0_i32 = arith.constant 0 : i32
    %c0_i32_0 = arith.constant 0 : i32
    %c0_i32_1 = arith.constant 0 : i32
    return %arg1, %c0_i32, %c0_i32_0 : i32, i32, i32
  }
  func.func @transform_13(%arg0: i32, %arg1: i32) -> (i32, i32, i32) {
    %c0_i32 = arith.constant 0 : i32
    %c0_i32_0 = arith.constant 0 : i32
    %c0_i32_1 = arith.constant 0 : i32
    return %arg0, %c0_i32, %c0_i32_0 : i32, i32, i32
  }
}

</mosaic_0001>

<bundles_post_ra>
// kernel: temporal_transformer.1
= control target key start
LH: loop header
LB: loop body
LE: loop exit
PB: predicated region body
PF: predicated region fallthrough
CT: control target
= control target key end

     0   :  { %s4166_s0 = inlined_call_operand.vmem [shape: f32[2,8,128], index: 0, kind: input, shape index: {}]   ;;  %s4167_s1 = inlined_call_operand.vmem [shape: f32[2,1,128], index: 1, kind: input, shape index: {}]   ;;  %s4168_s2 = inlined_call_operand.vmem [shape: f32[2,1,128], index: 2, kind: input, shape index: {}]   ;;  %s4169_s3 = inlined_call_operand.hbm [shape: bf16[2,128,384], index: 3, kind: input, shape index: {}]   ;;  %s4170_s4 = inlined_call_operand.vmem [shape: f32[2,1,384], index: 4, kind: input, shape index: {}]   ;;  %s4171_s5 = inlined_call_operand.hbm [shape: bf16[2,128,128], index: 5, kind: input, shape index: {}]   ;;  %s4172_s6 = inlined_call_operand.vmem [shape: f32[2,1,128], index: 6, kind: input, shape index: {}]   ;;  %s4173_s7 = inlined_call_operand.vmem [shape: f32[2,1,128], index: 7, kind: input, shape index: {}]   ;;  %s4174_s8 = inlined_call_operand.vmem [shape: f32[2,1,128], index: 8, kind: input, shape index: {}]   ;;  %s4175_s9 = inlined_call_operand.hbm [shape: bf16[2,128,512], index: 9, kind: input, shape index: {}]   ;;  %s4176_s10 = inlined_call_operand.vmem [shape: f32[2,1,512], index: 10, kind: input, shape index: {}]   ;;  %s4177_s11 = inlined_call_operand.hbm [shape: bf16[2,512,128], index: 11, kind: input, shape index: {}]   ;;  %s4178_s12 = inlined_call_operand.vmem [shape: f32[2,1,128], index: 12, kind: input, shape index: {}]   ;;  %s4179_s13 = inlined_call_operand.vmem [shape: f32[2,8,128], index: 13, kind: output, shape index: {}]  }
   0x1   :  { %4190 = sst [smem:[#allocation17_spill]] %s4166_s0 }
   0x2   :  { %4191 = sst [smem:[#allocation18_spill]] %s4169_s3 }
   0x3   :  { %4192 = sst [smem:[#allocation19_spill]] %s4170_s4 }
   0x4   :  { %4193 = sst [smem:[#allocation20_spill]] %s4171_s5 }
   0x5   :  { %4194 = sst [smem:[#allocation21_spill]] %s4173_s7 }
   0x6   :  { %4195 = sst [smem:[#allocation22_spill]] %s4174_s8 }
   0x7   :  { %4196 = sst [smem:[#allocation23_spill]] %s4175_s9 }
   0x8   :  { %4197 = sst [smem:[#allocation24_spill]] %s4176_s10 }
   0x9   :  { %4198 = sst [smem:[#allocation25_spill]] %s4177_s11 }
   0xa   :  { %4199 = sst [smem:[#allocation26_spill]] %s4178_s12 }
   0xb   :  { %4200 = sst [smem:[#allocation27_spill]] %s4179_s13 }
   0xc   :  { %18 = vsyncpa [#allocation3], 0 }
   0xd   :  { %20 = vsyncpa [#allocation3 + $0x1], 0 }
   0xe   :  { %21 = vsyncpa [#allocation5], 0 }
   0xf   :  { %23 = vsyncpa [#allocation5 + $0x1], 0 }
  0x10   :  { %24 = vsyncpa [#allocation8], 0 }
  0x11   :  { %26 = vsyncpa [#allocation8 + $0x1], 0  ;;  %s3581_s25 = smov 0   ;;  %s3583_s26 = smov 0  }
  0x12   :  { %s3585_s27 = smov 0   ;;  %s3587_s28 = smov 0  }
  0x13   :  { %s3589_s29 = smov 0   ;;  %s3591_s30 = smov 0  }
  0x14 LB: > { %4201 = sst [smem:[#allocation12_spill]] %s3483_s26  ;;  %s4180_s14 = sadd.s32 4294967295, %s3499_s30   ;;  %s3499_s30 = sphi %s3591_s30, %s32_s30   ;;  %s3495_s29 = sphi %s3589_s29, %s4234_s29   ;;  %s3491_s28 = sphi %s3587_s28, %s4233_s28   ;;  %s3487_s27 = sphi %s3585_s27, %s4232_s27   ;;  %s3483_s26 = sphi %s3583_s26, %s4231_s26   ;;  %s3479_s25 = sphi %s3581_s25, %s4230_s25  }
  0x15   : > { %4202 = sst [smem:[#allocation13_spill]] %s3487_s27  ;;  %s41_s15 = sadd.s32 1, %s3495_s29 }
  0x16   : > { %4203 = sst [smem:[#allocation14_spill]] %s3495_s29  ;;  %p42_p0 = scmp.ge.s32.totalorder %s41_s15, 2 }
  0x17   : > { %s129_s16 = sadd.s32 1, %s3487_s27  ;;  %p136_p1 = scmp.ne.s32.totalorder %s3487_s27, %s3483_s26 }
  0x18   : > { %p137_p2 = scmp.eq.s32.totalorder %s3499_s30, 0  ;;  %s4236_s15 = smov (%p42_p0, %s41_s15), 0 }
  0x19   : > { %4204 = sst [smem:[#allocation15_spill]] %s4236_s15  ;;  %p142_p4 = scmp.ne.s32.totalorder %s3483_s26, %s3479_s25 }
  0x1a   : > { %p138_p3 = por %p137_p2, %p136_p1  ;;  %s126_s17 = ssub.s32 %s3495_s29, %s4236_s15 }
  0x1b   : > { %p143_p5 = scmp.eq.s32.totalorder %s4180_s14, 0  ;;  %p127_p6 = scmp.eq.s32.totalorder %s126_s17, 0 }
  0x1c   : > { %p3165_p8 = scmp.lt.s32.totalorder %s3499_s30, 2  ;;  %s3631_s20 = sand.u32 1, %s3487_s27  }
  0x1d   : > { %p3622_p7 = por %p143_p5, %p142_p4  ;;  %s476_s22 = sand.u32 1, %s3499_s30  }
  0x1e   : > { %s3628_s19 = scalar_select %p127_p6, %s3487_s27, %s129_s16  }
  0x1f   : > { %p3633_p9 = pnand %p3165_p8, %p138_p3  ;;  %s2622_s23 = sshll.u32 %s3631_s20, 6 }
  0x20   : > { %4206 = sst [smem:[#allocation16_spill]] %s3628_s19  ;;  %s3041_s24 = sshll.u32 %s3495_s29, 6 }
  0x21   : > { %s4208_s5 = sld [smem:[#allocation20_spill]]  ;;  %s480_s16 = scalar_lea.vmem [#allocation4], %s2622_s23 }
  0x22   : > { %s488_s15 = sshll.u32 %s480_s16, 4  ;;  %p2631_p10 = scmp.ge.s32.totalorder %s3499_s30, 1  ;;  %s489_s15 = int_to_ptr.vmem [resolvable:$true] %s488_s15 }
  0x23   : > { %s3644_s27 = scalar_lea.sflag [#allocation5], %s476_s22  ;;  %s4186_s13 = smov 64  }
  0x24   : > { %s4187_s0 = smov 4   ;;  %p571_p11 = scmp.lt.s32.totalorder %s3499_s30, 3 }
  0x25   : > { %s3140_s23 = smul.u32 192, %s3631_s20  ;;  %s4210_s3 = sld [smem:[#allocation18_spill]] }
  0x26   : > { %p3653_p12 = pnand %p2631_p10, %p571_p11  ;;  %s3042_s10 = sshll.u32 %s3495_s29, 8 }
  0x27   : > { %s485_s14 = scalar_lea.hbm %s4208_s5, %s3041_s24  ;;  %s3141_s24 = smul.u32 192, %s3495_s29 }
  0x28   : > { %s486_s19 = sshll.u32 %s485_s14, 4  ;;  %s451_s16 = scalar_lea.vmem [#allocation2], %s3140_s23  ;;  %s487_s19 = int_to_ptr.hbm [resolvable:$true] %s486_s19 }
  0x29   : > { %3158 = dma.hbm_to_vmem [thread:$0]  (!%p3633_p9), %s487_s19, 1024, %s489_s15, %s3644_s27, %s4186_s13, %s4186_s13, %s4187_s0  }
  0x2a   : > { %s459_s5 = sshll.u32 %s451_s16, 4  ;;  %s2625_s15 = sshll.u32 %s3631_s20, 8  ;;  %s460_s5 = int_to_ptr.vmem [resolvable:$true] %s459_s5 }
  0x2b   : > { %s456_s17 = scalar_lea.hbm %s4210_s3, %s3141_s24  ;;  %s448_s19 = scalar_lea.sflag [#allocation3], %s3631_s20 }
  0x2c   : > { %s457_s12 = sshll.u32 %s456_s17, 4  ;;  %s3503_s13 = smov 192   ;;  %s458_s12 = int_to_ptr.hbm [resolvable:$true] %s457_s12 }
  0x2d   : > { %s3504_s0 = smov 12   ;;  %s4211_s9 = sld [smem:[#allocation23_spill]] }
  0x2e   : > { %3155 = dma.hbm_to_vmem [thread:$0]  (!%p3633_p9), %s458_s12, 3072, %s460_s5, %s448_s19, %s3503_s13, %s3503_s13, %s3504_s0  }
  0x2f   : > { %s520_s23 = scalar_lea.vmem [#allocation6], %s2625_s15  ;;  %s3505_s17 = smov 256  }
  0x30   : > { %s528_s24 = sshll.u32 %s520_s23, 4  ;;  %s3506_s16 = smov 16   ;;  %s529_s24 = int_to_ptr.vmem [resolvable:$true] %s528_s24 }
  0x31   : > { %s4212_s11 = sld [smem:[#allocation25_spill]]  ;;  %s549_s12 = scalar_lea.vmem [#allocation7], %s2625_s15 }
  0x32   : > { %s557_s13 = sshll.u32 %s549_s12, 4  ;;  %s546_s4 = scalar_lea.sflag [#allocation8], %s3631_s20  ;;  %s558_s13 = int_to_ptr.vmem [resolvable:$true] %s557_s13 }
  0x33   : > { %s525_s25 = scalar_lea.hbm %s4211_s9, %s3042_s10  ;;  %s4213_s8 = smov 4  }
  0x34   : > { %s526_s22 = sshll.u32 %s525_s25, 4  ;;  %s4214_s19 = smov 64   ;;  %s527_s22 = int_to_ptr.hbm [resolvable:$true] %s526_s22 }
  0x35   : > { %3161 = dma.hbm_to_vmem [thread:$0]  (!%p3633_p9), %s527_s22, 4096, %s529_s24, %s3644_s27, %s3505_s17, %s3505_s17, %s3506_s16  }
  0x36   : > { %575 = sbr.rel (%p3653_p12) target bundleno = 2099 (0x833), region = 72  ;;  %s577_s27 = sand.u32 (!%p3653_p12), 1, %s3483_s26  }
  0x37   : > { %s554_s0 = scalar_lea.hbm %s4212_s11, %s3042_s10  ;;  %s3142_s25 = smul.u32 (!%p3653_p12), 192, %s577_s27 }
  0x38   : > { %s555_s5 = sshll.u32 %s554_s0, 4  ;;  %s578_s3 = scalar_lea.sflag (!%p3653_p12), [#allocation3], %s577_s27  ;;  %s556_s5 = int_to_ptr.hbm [resolvable:$true] %s555_s5 }
  0x39   : > { %3164 = dma.hbm_to_vmem [thread:$0]  (!%p3633_p9), %s556_s5, 4096, %s558_s13, %s546_s4, %s4214_s19, %s4214_s19, %s4213_s8  }
  0x3a   : > { %s3685_s7 = scalar_lea.vmem (!%p3653_p12), [#allocation2], %s3142_s25 }
  0x3b   : > { %3466 = dma.done.wait (%p3622_p7), %s578_s3, 3072  }
  0x3c   : > { %3468 = vsyncadd (%p3622_p7), %s578_s3, 4294964224  ;;  %s4215_s10 = sadd.s32 4294967295, %s3499_s30   ;;  %s2632_s21 = sshll.u32 %s577_s27, 6 }
  0x3d   : > { %s587_s20 = sand.u32 1, %s4215_s10   ;;  %s3693_s14 = scalar_lea.vmem [#allocation4], %s2632_s21 }
  0x3e   : > { %s588_s15 = scalar_lea.sflag [#allocation5], %s587_s20 }
  0x3f   : > { %3470 = dma.done.wait (%p3622_p7), %s588_s15, 5120  }
  0x40   : > { %3472 = vsyncadd (%p3622_p7), %s588_s15, 4294962176  ;;  %s2633_s23 = sshll.u32 %s577_s27, 8  ;;  %s608_s22 = scalar_lea.sflag [#allocation8], %s577_s27 }
  0x41   : > { %s3699_s24 = scalar_lea.vmem [#allocation6], %s2633_s23  ;;  %s3701_s17 = scalar_lea.vmem [#allocation7], %s2633_s23 }
  0x42   : > { %3474 = dma.done.wait (%p3622_p7), %s608_s22, 4096  }
  0x43   : > { %3476 = vsyncadd (%p3622_p7), %s608_s22, 4294963200  ;;  %p707_p13 = scmp.lt.s32.totalorder %s3491_s28, 1  ;;  %s4216_s20 = sld [smem:[#allocation21_spill]] }
  0x44   : > { %s4217_s22 = sld [smem:[#allocation22_spill]]  ;;  %p2636_p0 = scmp.ne.s32.totalorder %s3491_s28, 0 }
  0x45   : > { %s3709_s16 = scalar_select %p707_p13, %s3491_s28, 1 }
  0x46   : > { %s4218_s12 = sld [smem:[#allocation19_spill]] }
  0x47   : > { %s3143_s8 = smul.u32 3, %s3709_s16  ;;  %s2635_s13 = sshll.u32 %s3709_s16, 2 }
  0x48   : > { %s4219_s29 = sld [smem:[#allocation24_spill]] }
  0x49   : > { %s722_s21 = scalar_lea.vmem %s4216_s20, %s3709_s16  ;;  %s4220_s25 = sld [smem:[#allocation26_spill]] }
  0x4a   : > { %s725_s0 = scalar_lea.vmem %s4217_s22, %s3709_s16  ;;  %s4221_s15 = sld [smem:[#allocation17_spill]] (!%p2636_p0) }
  0x4b   : > { %743 = sbr.rel (%p2636_p0) target bundleno = 83 (0x53), region = 92  ;;  %s4222_s4 = sld [smem:[#allocation27_spill]] (!%p2636_p0) }
  0x4c   : > { %s3735_s11 = scalar_lea.vmem %s4218_s12, %s3143_s8 }
  0x4e   : > { %s3741_s26 = scalar_lea.vmem %s4219_s29, %s2635_s13 }
  0x4f   : > { %s732_s3 = scalar_lea.vmem %s4220_s25, %s3709_s16 }
  0x50   : > { %v744_v0 = vld [vmem:[%s4221_s15] sm:$0xff]  ;;  %v745_v1 = vld [vmem:[%s4221_s15 + $0x8] sm:$0xff] }
  0x51   : > { %746 = vst [vmem:[%s4222_s4] sm:$0xff] %v744_v0 }
  0x52   : > { %747 = vst [vmem:[%s4222_s4 + $0x8] sm:$0xff] %v745_v1 }
  0x53 PF: > { %s4223_s5 = sld [smem:[#allocation27_spill]]  ;;  %v3507_v4 = vmov 128.0   ;;  %v2723_v19 = vld [vmem:[%s3685_s7 + $0xa8] sm:$0xf]  ;;  %v3066_v20 = vld [vmem:[%s3685_s7 + $0xb0] sm:$0xf0]  ;;  %s4224_s27 = scalar_lea.vmem %s4167_s1, %s3709_s16 }
  0x54   : > { %3245 = vrcp.f32 %v3507_v4  ;;  %v3065_v21 = vld [vmem:[%s3685_s7 + $0xac] sm:$0xf]  ;;  %v2724_v22 = vor.u32 %v3066_v20, %v2723_v19  ;;  %v2725_v23 = vld [vmem:[%s3685_s7 + $0xb4] sm:$0xf0]  ;;  %v2731_v24 = vld [vmem:[%s3685_s7 + $0xb0] sm:$0xf]  ;;  %s4225_s9 = scalar_lea.vmem %s4168_s2, %s3709_s16  ;;  %s4226_s4 = scalar_lea.vmem %s4172_s6, %s3709_s16 }
  0x55   : > { %v3067_v25 = vld [vmem:[%s3685_s7 + $0xb8] sm:$0xf0]  ;;  %v2728_v26 = vor.u32 %v3065_v21, %v2725_v23  ;;  %v2711_v28 = vld [vmem:[%s3685_s7 + $0x90] sm:$0xf]  ;;  %v3062_v30 = vld [vmem:[%s3685_s7 + $0x94] sm:$0xf] }
  0x56   : > { %v2732_v27 = vor.u32 %v3067_v25, %v2731_v24  ;;  %1095 = vmatpush.bf16.msra.mxu0 %v2724_v22  ;;  %v3063_v29 = vld [vmem:[%s3685_s7 + $0x98] sm:$0xf0]  ;;  %v2713_v32 = vld [vmem:[%s3685_s7 + $0x9c] sm:$0xf0]  ;;  %v2719_v33 = vld [vmem:[%s3685_s7 + $0x98] sm:$0xf] }
  0x57   : > { %1109 = vmatpush.bf16.msra.mxu1 %v2728_v26  ;;  %v2712_v31 = vor.u32 %v3063_v29, %v2711_v28  ;;  %v3064_v34 = vld [vmem:[%s3685_s7 + $0xa0] sm:$0xf0]  ;;  %v2716_v35 = vor.u32 %v3062_v30, %v2713_v32  ;;  %v2699_v37 = vld [vmem:[%s3685_s7 + $0x78] sm:$0xf]  ;;  %v3059_v39 = vld [vmem:[%s3685_s7 + $0x7c] sm:$0xf] }
  0x58   : > { %1123 = vmatpush.bf16.msra.mxu2 %v2732_v27  ;;  %v2720_v36 = vor.u32 %v3064_v34, %v2719_v33  ;;  %v3060_v38 = vld [vmem:[%s3685_s7 + $0x80] sm:$0xf0]  ;;  %v2701_v41 = vld [vmem:[%s3685_s7 + $0x84] sm:$0xf0]  ;;  %v2707_v42 = vld [vmem:[%s3685_s7 + $0x80] sm:$0xf] }
  0x59   : > { %v748_v2 = vld [vmem:[%s4223_s5] sm:$0xff]  ;;  %v749_v3 = vld [vmem:[%s4223_s5 + $0x8] sm:$0xff]  ;;  %v2700_v40 = vor.u32 %v3060_v38, %v2699_v37  ;;  %v2704_v44 = vor.u32 %v3059_v39, %v2701_v41  ;;  %v2689_v50 = vld [vmem:[%s3685_s7 + $0x6c] sm:$0xf0]  ;;  %vm1145_vm7 = vcmask 261120   ;;  %vm1238_vm8 = vcmask 1043456  }
  0x5a   : > { %902 = vadd.xlane.f32.xlu0 %v748_v2  ;;  %v3246_v5 = vpop.eup %3245  ;;  %1096 = vmatpush.bf16.msra.mxu0 %v2712_v31  ;;  %v3061_v43 = vld [vmem:[%s3685_s7 + $0x88] sm:$0xf0]  ;;  %v2687_v46 = vld [vmem:[%s3685_s7 + $0x60] sm:$0xf]  ;;  %v3056_v48 = vld [vmem:[%s3685_s7 + $0x64] sm:$0xf] }
  0x5b   : > { %v907_v6 = vmul.f32 128.0, %v3246_v5  ;;  %vm911_vm0 = vweird.f32 %v3246_v5  ;;  %1110 = vmatpush.bf16.msra.mxu1 %v2716_v35  ;;  %v2708_v45 = vor.u32 %v3061_v43, %v2707_v42  ;;  %v3057_v47 = vld [vmem:[%s3685_s7 + $0x68] sm:$0xf0]  ;;  %v2695_v51 = vld [vmem:[%s3685_s7 + $0x68] sm:$0xf]  ;;  %v2692_v53 = vor.u32 %v3056_v48, %v2689_v50  ;;  %s3509_s12 = smov 32  }
  0x5c   : > { %1124 = vmatpush.bf16.msra.mxu2 %v2720_v36  ;;  %v2688_v49 = vor.u32 %v3057_v47, %v2687_v46  ;;  %v3058_v52 = vld [vmem:[%s3685_s7 + $0x70] sm:$0xf0]  ;;  %v2675_v55 = vld [vmem:[%s3685_s7 + $0x48] sm:$0xf]  ;;  %v3053_v57 = vld [vmem:[%s3685_s7 + $0x4c] sm:$0xf] }
  0x5d   : > { %v908_v7 = vsub.f32 1.0, %v907_v6  ;;  %v2696_v54 = vor.u32 %v3058_v52, %v2695_v51  ;;  %v3054_v56 = vld [vmem:[%s3685_s7 + $0x50] sm:$0xf0]  ;;  %v2677_v59 = vld [vmem:[%s3685_s7 + $0x54] sm:$0xf0]  ;;  %s3510_s8 = smov 64  }
  0x5e   : > { %1097 = vmatpush.bf16.msra.mxu0 %v2700_v40  ;;  %v2676_v58 = vor.u32 %v3054_v56, %v2675_v55  ;;  %v2683_v60 = vld [vmem:[%s3685_s7 + $0x50] sm:$0xf]  ;;  %v3055_v61 = vld [vmem:[%s3685_s7 + $0x58] sm:$0xf0]  ;;  %v2680_v62 = vor.u32 %v3053_v57, %v2677_v59  ;;  %v2665_v4 = vld [vmem:[%s3685_s7 + $0x3c] sm:$0xf0] }
  0x5f   : > { %v909_v8 = vmul.f32 %v3246_v5, %v908_v7  ;;  %1111 = vmatpush.bf16.msra.mxu1 %v2704_v44  ;;  %v2684_v63 = vor.u32 %v3055_v61, %v2683_v60  ;;  %v2663_v0 = vld [vmem:[%s3685_s7 + $0x30] sm:$0xf]  ;;  %v3051_v1 = vld [vmem:[%s3685_s7 + $0x38] sm:$0xf0]  ;;  %v3052_v6 = vld [vmem:[%s3685_s7 + $0x40] sm:$0xf0] }
  0x60   : > { %1125 = vmatpush.bf16.msra.mxu2 %v2708_v45  ;;  %v2639_v21 = vld [vmem:[%s3685_s7] sm:$0xf]  ;;  %v3045_v22 = vld [vmem:[%s3685_s7 + $0x8] sm:$0xf0]  ;;  %v3044_v23 = vld [vmem:[%s3685_s7 + $0x4] sm:$0xf] }
  0x61   : > { %v910_v9 = vadd.f32 %v3246_v5, %v909_v8  ;;  %v2640_v25 = vor.u32 %v3045_v22, %v2639_v21  ;;  %v2641_v26 = vld [vmem:[%s3685_s7 + $0xc] sm:$0xf0]  ;;  %v2647_v27 = vld [vmem:[%s3685_s7 + $0x8] sm:$0xf]  ;;  %v3046_v28 = vld [vmem:[%s3685_s7 + $0x10] sm:$0xf0] }
  0x62   : > { %904 = vadd.xlane.f32.xlu0 %v749_v3  ;;  %1098 = vmatpush.bf16.msra.mxu0 %v2688_v49  ;;  %v2644_v30 = vor.u32 %v3044_v23, %v2641_v26  ;;  %v2648_v31 = vor.u32 %v3046_v28, %v2647_v27  ;;  %v3239_v49 = vld [vmem:[%s4224_s27] ss:$0 sm:$0xff]  ;;  %vm1184_vm9 = vcmask 64512  }
  0x63   : > { %v3766_v10 = vsel %vm911_vm0, %v3246_v5, %v910_v9  ;;  %1112 = vmatpush.bf16.msra.mxu1 %v2692_v53  ;;  %v2671_v5 = vld [vmem:[%s3685_s7 + $0x38] sm:$0xf] }
  0x64   : > { %1126 = vmatpush.bf16.msra.mxu2 %v2696_v54  ;;  %v2672_v8 = vor.u32 %v3052_v6, %v2671_v5  ;;  %v2651_v9 = vld [vmem:[%s3685_s7 + $0x18] sm:$0xf]  ;;  %v3240_v54 = vld [vmem:[%s4225_s9] ss:$0 sm:$0xff] }
  0x66   : > { %1099 = vmatpush.bf16.msra.mxu0 %v2676_v58  ;;  %v786_v58 = vld [vmem:[%s3735_s11] sm:$0x7]  ;;  %s3508_s11 = smov 96  }
  0x67   : > { %1113 = vmatpush.bf16.msra.mxu1 %v2680_v62  ;;  %v961_v59 = vperm.slane %v786_v58, 0  ;;  %v962_v60 = vperm.slane %v786_v58, 1 }
  0x68   : > { %1127 = vmatpush.bf16.msra.mxu2 %v2684_v63 }
  0x6c   : > { %1128 = vmatpush.bf16.msra.mxu2 %v2672_v8 }
  0xcd   : > { %v903_v11 = vpop.xlane.xlu0 %902 }
  0xce   : > { %v913_v12 = vmul.f32 %v3766_v10, %v903_v11  ;;  %v3048_v11 = vld [vmem:[%s3685_s7 + $0x20] sm:$0xf0] }
  0xd0   : > { %v3769_v13 = vsub.f32 %v748_v2, %v913_v12  ;;  %v3050_v2 = vld [vmem:[%s3685_s7 + $0x34] sm:$0xf]  ;;  %v3047_v12 = vld [vmem:[%s3685_s7 + $0x1c] sm:$0xf] }
  0xd1   : > { %v2668_v7 = vor.u32 %v3050_v2, %v2665_v4 }
  0xd2   : > { %v917_v14 = vmul.f32 %v3769_v13, %v3769_v13 }
  0xd3   : > { %1114 = vmatpush.bf16.msra.mxu1 %v2668_v7 }
  0xd4   : > { %919 = vadd.xlane.f32.xlu1 %v917_v14  ;;  %v2652_v14 = vor.u32 %v3048_v11, %v2651_v9 }
  0xd5   : > { %v905_v15 = vpop.xlane.xlu0 %904 }
  0xd6   : > { %v914_v16 = vmul.f32 %v3766_v10, %v905_v15  ;;  %v2653_v15 = vld [vmem:[%s3685_s7 + $0x24] sm:$0xf0] }
  0xd7   : > { %v2656_v19 = vor.u32 %v3047_v12, %v2653_v15 }
  0xd8   : > { %v3774_v17 = vsub.f32 %v749_v3, %v914_v16  ;;  %v2664_v3 = vor.u32 %v3051_v1, %v2663_v0  ;;  %v2659_v16 = vld [vmem:[%s3685_s7 + $0x20] sm:$0xf]  ;;  %v963_v1 = vperm.slane %v786_v58, 2 }
  0xd9   : > { %1115 = vmatpush.bf16.msra.mxu1 %v2656_v19 }
  0xda   : > { %v918_v18 = vmul.f32 %v3774_v17, %v3774_v17  ;;  %1100 = vmatpush.bf16.msra.mxu0 %v2664_v3 }
  0xdc   : > { %921 = vadd.xlane.f32.xlu1 %v918_v18  ;;  %v3049_v18 = vld [vmem:[%s3685_s7 + $0x28] sm:$0xf0] }
  0xdd   : > { %v2660_v20 = vor.u32 %v3049_v18, %v2659_v16  ;;  %1116 = vmatpush.bf16.msra.mxu1 %v2644_v30 }
  0xde   : > { %1101 = vmatpush.bf16.msra.mxu0 %v2652_v14 }
  0xdf   : > { %1129 = vmatpush.bf16.msra.mxu2 %v2660_v20 }
  0xe2   : > { %1102 = vmatpush.bf16.msra.mxu0 %v2640_v25 }
  0xe3   : > { %1130 = vmatpush.bf16.msra.mxu2 %v2648_v31 }
 0x147   : > { %v920_v24 = vpop.xlane.xlu1 %919 }
 0x148   : > { %v923_v29 = vmul.f32 %v920_v24, %v3766_v10 }
 0x14a   : > { %v925_v32 = vadd.f32 1e-12, %v923_v29 }
 0x14c   : > { %3247 = vrsqrt.f32 %v925_v32  ;;  %vm933_vm2 = vweird.f32 %v925_v32 }
 0x14f   : > { %v922_v33 = vpop.xlane.xlu1 %921 }
 0x150   : > { %v924_v34 = vmul.f32 %v922_v33, %v3766_v10 }
 0x152   : > { %v3248_v35 = vpop.eup %3247  ;;  %v926_v36 = vadd.f32 1e-12, %v924_v34 }
 0x153   : > { %v928_v37 = vmul.f32 %v3248_v35, %v925_v32  ;;  %vm934_vm1 = vweird.f32 %v3248_v35 }
 0x154   : > { %3249 = vrsqrt.f32 %v926_v36  ;;  %vm935_vm3 = vmor %vm933_vm2, %vm934_vm1  ;;  %vm943_vm5 = vweird.f32 %v926_v36 }
 0x155   : > { %v929_v38 = vmul.f32 %v3248_v35, %v928_v37 }
 0x157   : > { %v930_v39 = vmul.f32 0.5, %v929_v38 }
 0x159   : > { %v931_v40 = vsub.f32 1.5, %v930_v39 }
 0x15a   : > { %v3250_v41 = vpop.eup %3249 }
 0x15b   : > { %v932_v42 = vmul.f32 %v3248_v35, %v931_v40  ;;  %v938_v43 = vmul.f32 %v3250_v41, %v926_v36  ;;  %vm944_vm4 = vweird.f32 %v3250_v41 }
 0x15c   : > { %vm945_vm6 = vmor %vm943_vm5, %vm944_vm4 }
 0x15d   : > { %v939_v44 = vmul.f32 %v3250_v41, %v938_v43  ;;  %v936_v45 = vsel %vm935_vm3, %v3248_v35, %v932_v42 }
 0x15e   : > { %v947_v48 = vmul.f32 %v936_v45, %v3769_v13 }
 0x15f   : > { %v940_v46 = vmul.f32 0.5, %v939_v44 }
 0x160   : > { %v952_v53 = vmul.f32 %v3239_v49, %v947_v48 }
 0x161   : > { %v941_v47 = vsub.f32 1.5, %v940_v46 }
 0x162   : > { %v957_v13 = vadd.f32 %v3240_v54, %v952_v53 }
 0x163   : > { %v942_v50 = vmul.f32 %v3250_v41, %v941_v47 }
 0x165   : > { %v946_v51 = vsel %vm945_vm6, %v3250_v41, %v942_v50 }
 0x166   : > { %v948_v52 = vmul.f32 %v946_v51, %v3774_v17 }
 0x168   : > { %v953_v55 = vmul.f32 %v3239_v49, %v948_v52 }
 0x16a   : > { %v958_v56 = vadd.f32 %v3240_v54, %v953_v55 }
 0x16c   : > { %v959_v57 = vpack.c.bf16 %v958_v56, %v957_v13 }
 0x16e   : > { %1103 = vmatmul.bf16.vlgmr.msra.gmra.mxu0 %v959_v57  ;;  %1117 = vmatmul.bf16.vlgmr.msra.gmra.mxu1 %v959_v57 }
 0x16f   : > { %1131 = vmatmul.bf16.vlgmr.msra.gmra.mxu2 %v959_v57 }
 0x1eb   : > { %v1104_v61 = vpop.f32.mrf.mxu0  ;;  %v1118_v62 = vpop.f32.mrf.mxu1 }
 0x1ec   : > { %v1105_v63 = vadd.f32 %v1104_v61, %v961_v59  ;;  %v1119_v17 = vadd.f32 %v1118_v62, %v962_v60 }
 0x1ee   : > { %v1137_v0 = vpack.c.bf16 %v1119_v17, %v1105_v63 }
 0x1f0   : > { %v1143_v2 = vrot.slane %v1137_v0, 4  ;;  %v1274_v19 = vunpack.c.l.b16 %v1137_v0 }
 0x1f2   : > { %v1132_v3 = vpop.f32.mrf.mxu2  ;;  %v1150_v4 = vsel %vm1145_vm7, %v1143_v2, 0  ;;  %v1278_v5 = vunpack.c.l.b16 %v1143_v2  ;;  %v1275_v27 = vpack.c.b16 %v1274_v19, %v1274_v19 }
 0x1f3   : > { %v1133_v6 = vadd.f32 %v1132_v3, %v963_v1  ;;  %v1106_v7 = vpop.f32.mrf.mxu0  ;;  %v1120_v8 = vpop.f32.mrf.mxu1  ;;  %1159 = vmatpush.bf16.xpose.msra.mxu3 %v1150_v4 }
 0x1f4   : > { %v1107_v9 = vadd.f32 %v1106_v7, %v961_v59  ;;  %v1121_v11 = vadd.f32 %v1120_v8, %v962_v60  ;;  %v1279_v12 = vpack.c.b16 %v1278_v5, %v1278_v5 }
 0x1f5   : > { %v3843_v15 = vpack.c.bf16 %v1133_v6, %v1133_v6 }
 0x1f6   : > { %v1139_v14 = vpack.c.bf16 %v1121_v11, %v1107_v9  ;;  %1280 = vrot.lane.b32.xlu2 %v1279_v12, %s3508_s11 }
 0x1f7   : > { %v1240_v24 = vsel %vm1238_vm8, %v3843_v15, 0 }
 0x1f8   : > { %v1144_v16 = vrot.slane %v1139_v14, 4  ;;  %v1301_v18 = vunpack.c.l.b16 %v1139_v14 }
 0x1fa   : > { %v1134_v20 = vpop.f32.mrf.mxu2  ;;  %2733 = vmatmul.msk.bf16.vlgmr.msra.gmra.mxu3 %vm1145_vm7, %v1137_v0  ;;  %v1169_v21 = vsel %vm1145_vm7, %v1144_v16, 0  ;;  %v1302_v22 = vpack.c.b16 %v1301_v18, %v1301_v18  ;;  %v1305_v23 = vunpack.c.l.b16 %v1144_v16 }
 0x1fb   : > { %v1135_v25 = vadd.f32 %v1134_v20, %v963_v1  ;;  %1178 = vmatpush.bf16.xpose.msrb.mxu3 %v1169_v21 }
 0x1fc   : > { %1303 = vrot.lane.b32.xlu1 %v1302_v22, %s3508_s11  ;;  %v1306_v26 = vpack.c.b16 %v1305_v23, %v1305_v23 }
 0x1fd   : > { %v3850_v28 = vpack.c.bf16 %v1135_v25, %v1135_v25 }
 0x1fe   : > { %1307 = vrot.lane.b32.xlu0 %v1306_v26, %s3508_s11  ;;  %1276 = vrot.lane.b32.xlu2 %v1275_v27, %s3508_s11 }
 0x1ff   : > { %v1259_v29 = vsel %vm1238_vm8, %v3850_v28, 0 }
 0x200   : > { %1268 = vmatpush.bf16.msrb.mxu0 %v1259_v29  ;;  %v1379_v29 = vunpack.c.l.b16 %v3843_v15 }
 0x203   : > { %1249 = vmatpush.bf16.msra.mxu3 %v1240_v24 }
 0x204   : > { %1589 = vrot.lane.b32.xlu1 %v1306_v26, %s3509_s12 }
 0x206   : > { %1449 = vrot.lane.b32.xlu0 %v1302_v22, %s3510_s8  ;;  %1428 = vrot.lane.b32.xlu2 %v1279_v12, %s3510_s8 }
 0x20a   : > { %2734 = vmatmul.msk.bf16.vlgmr.msrb.gmra.mxu3 %vm1145_vm7, %v1139_v14 }
 0x20e   : > { %1564 = vrot.lane.b32.xlu0 %v1275_v27, %s3509_s12  ;;  %1451 = vrot.lane.b32.xlu2 %v1306_v26, %s3510_s8 }
 0x216   : > { %1426 = vrot.lane.b32.xlu2 %v1275_v27, %s3510_s8 }
 0x21e   : > { %1566 = vrot.lane.b32.xlu2 %v1279_v12, %s3509_s12 }
 0x226   : > { %1587 = vrot.lane.b32.xlu2 %v1302_v22, %s3509_s12 }
 0x250   : > { %v1281_v30 = vpop.permute.xlu2 %1280 }
 0x251   : > { %v1286_v31 = vsel %vm1145_vm7, %v1281_v30, 0 }
 0x252   : > { %1295 = vmatpush.bf16.xpose.msrb.mxu2 %v1286_v31 }
 0x258   : > { %v1277_v32 = vpop.permute.xlu2 %1276 }
 0x259   : > { %2737 = vmatmul.msk.bf16.vlgmr.msrb.gmra.mxu2 %vm1145_vm7, %v1277_v32  ;;  %v3908_v32 = vpack.c.b16 %v1379_v29, %v1379_v29 }
 0x260   : > { %v1429_v33 = vpop.permute.xlu2 %1428 }
 0x261   : > { %v1434_v34 = vsel %vm1145_vm7, %v1429_v33, 0 }
 0x262   : > { %1443 = vmatpush.bf16.xpose.msrb.mxu1 %v1434_v34 }
 0x268   : > { %v1452_v35 = vpop.permute.xlu2 %1451 }
 0x269   : > { %v1457_v40 = vsel %vm1145_vm7, %v1452_v35, 0 }
 0x26e   : > { %v1304_v36 = vpop.permute.xlu1 %1303 }
 0x270   : > { %v1308_v37 = vpop.permute.xlu0 %1307  ;;  %v1427_v38 = vpop.permute.xlu2 %1426 }
 0x271   : > { %v1313_v39 = vsel %vm1145_vm7, %v1308_v37, 0  ;;  %2741 = vmatmul.msk.bf16.vlgmr.msrb.gmra.mxu1 %vm1145_vm7, %v1427_v38 }
 0x272   : > { %1322 = vmatpush.bf16.xpose.msra.mxu2 %v1313_v39 }
 0x276   : > { %v1590_v41 = vpop.permute.xlu1 %1589 }
 0x277   : > { %v1595_v44 = vsel %vm1145_vm7, %v1590_v41, 0 }
 0x278   : > { %v1450_v42 = vpop.permute.xlu0 %1449  ;;  %v1567_v43 = vpop.permute.xlu2 %1566 }
 0x279   : > { %v1572_v45 = vsel %vm1145_vm7, %v1567_v43, 0  ;;  %2738 = vmatmul.msk.bf16.vlgmr.msra.gmra.mxu2 %vm1145_vm7, %v1304_v36 }
 0x27a   : > { %1466 = vmatpush.bf16.xpose.msrb.mxu2 %v1457_v40  ;;  %1581 = vmatpush.bf16.xpose.msra.mxu1 %v1572_v45 }
 0x27d   : > { %v1161_v46 = vpop.f32.mrf.mxu3 }
 0x27e   : > { %v1185_v47 = vsel %vm1184_vm9, %v1161_v46, -inf }
 0x27f   : > { %1186 = vmax.xlane.f32.xlu1 %v1185_v47 }
 0x280   : > { %v1565_v48 = vpop.permute.xlu0 %1564  ;;  %v1588_v53 = vpop.permute.xlu2 %1587 }
 0x281   : > { %2745 = vmatmul.msk.bf16.vlgmr.msra.gmra.mxu1 %vm1145_vm7, %v1565_v48 }
 0x282   : > { %1604 = vmatpush.bf16.xpose.msra.mxu2 %v1595_v44 }
 0x285   : > { %v1163_v49 = vpop.f32.mrf.mxu3 }
 0x286   : > { %v1403_v49 = vunpack.c.l.b16 %v3850_v28 }
 0x289   : > { %2742 = vmatmul.msk.bf16.vlgmr.msrb.gmra.mxu2 %vm1145_vm7, %v1450_v42 }
 0x28d   : > { %v1180_v50 = vpop.f32.mrf.mxu3 }
 0x28e   : > { %v1188_v51 = vsel %vm1184_vm9, %v1180_v50, -inf }
 0x28f   : > { %1189 = vmax.xlane.f32.xlu0 %v1188_v51 }
 0x295   : > { %v1182_v52 = vpop.f32.mrf.mxu3 }
 0x299   : > { %2746 = vmatmul.msk.bf16.vlgmr.msra.gmra.mxu2 %vm1145_vm7, %v1588_v53 }
 0x2dc   : > { %v1297_v54 = vpop.f32.mrf.mxu2 }
 0x2dd   : > { %v1328_v55 = vsel %vm1184_vm9, %v1297_v54, -inf }
 0x2de   : > { %1329 = vmax.xlane.f32.xlu2 %v1328_v55  ;;  %v1404_v55 = vpack.c.b16 %v1403_v49, %v1403_v49 }
 0x2e4   : > { %v1299_v13 = vpop.f32.mrf.mxu2 }
 0x2ee   : > { %v1445_v56 = vpop.f32.mrf.mxu1 }
 0x2ef   : > { %v1472_v57 = vsel %vm1184_vm9, %v1445_v56, -inf }
 0x2f0   : > { %1473 = vmax.xlane.f32.xlu0 %v1472_v57 }
 0x2f2   : > { %v1187_v58 = vpop.xlane.xlu1 %1186 }
 0x2f3   : > { %v1191_v59 = vsub.f32 %v1161_v46, %v1187_v58 }
 0x2f5   : > { %v1193_v60 = vmul.f32 1.442695, %v1191_v59 }
 0x2f6   : > { %v1447_v61 = vpop.f32.mrf.mxu1 }
 0x2f7   : > { %3251 = vpow2.f32 %v1193_v60 }
 0x2fc   : > { %v1324_v62 = vpop.f32.mrf.mxu2 }
 0x2fd   : > { %v3881_v63 = vpop.eup %3251  ;;  %v1331_v17 = vsel %vm1184_vm9, %v1324_v62, -inf }
 0x2fe   : > { %v1583_v0 = vpop.f32.mrf.mxu1  ;;  %1332 = vmax.xlane.f32.xlu1 %v1331_v17  ;;  %v1197_v1 = vsel %vm1184_vm9, %v3881_v63, 0.0 }
 0x2ff   : > { %1198 = vadd.xlane.f32.xlu0 %v1197_v1  ;;  %v1610_v6 = vsel %vm1184_vm9, %v1583_v0, -inf }
 0x302   : > { %v1190_v2 = vpop.xlane.xlu0 %1189 }
 0x303   : > { %v1192_v3 = vsub.f32 %v1180_v50, %v1190_v2 }
 0x304   : > { %v1326_v4 = vpop.f32.mrf.mxu2 }
 0x305   : > { %v1195_v5 = vmul.f32 1.442695, %v1192_v3 }
 0x306   : > { %v1585_v7 = vpop.f32.mrf.mxu1  ;;  %1611 = vmax.xlane.f32.xlu1 %v1610_v6 }
 0x307   : > { %3253 = vpow2.f32 %v1195_v5 }
 0x30c   : > { %v3887_v8 = vpop.f32.mrf.mxu2 }
 0x30d   : > { %v3889_v9 = vpop.eup %3253  ;;  %v1475_v11 = vsel %vm1184_vm9, %v3887_v8, -inf }
 0x30e   : > { %1476 = vmax.xlane.f32.xlu2 %v1475_v11  ;;  %v1200_v12 = vsel %vm1184_vm9, %v3889_v9, 0.0 }
 0x30f   : > { %1201 = vadd.xlane.f32.xlu1 %v1200_v12 }
 0x314   : > { %v1470_v14 = vpop.f32.mrf.mxu2 }
 0x31c   : > { %v3895_v16 = vpop.f32.mrf.mxu2 }
 0x31d   : > { %v1613_v18 = vsel %vm1184_vm9, %v3895_v16, -inf }
 0x31e   : > { %1614 = vmax.xlane.f32.xlu2 %v1613_v18 }
 0x324   : > { %v1608_v19 = vpop.f32.mrf.mxu2 }
 0x351   : > { %v1330_v20 = vpop.xlane.xlu2 %1329 }
 0x352   : > { %v1334_v21 = vsub.f32 %v1297_v54, %v1330_v20 }
 0x354   : > { %v1336_v22 = vmul.f32 1.442695, %v1334_v21 }
 0x356   : > { %3255 = vpow2.f32 %v1336_v22 }
 0x35c   : > { %v3899_v23 = vpop.eup %3255 }
 0x35d   : > { %v1340_v24 = vsel %vm1184_vm9, %v3899_v23, 0.0 }
 0x35e   : > { %1341 = vadd.xlane.f32.xlu0 %v1340_v24 }
 0x363   : > { %v1474_v25 = vpop.xlane.xlu0 %1473 }
 0x364   : > { %v1478_v26 = vsub.f32 %v1445_v56, %v1474_v25 }
 0x366   : > { %v1480_v27 = vmul.f32 1.442695, %v1478_v26 }
 0x368   : > { %3257 = vpow2.f32 %v1480_v27 }
 0x36e   : > { %v3904_v30 = vpop.eup %3257 }
 0x36f   : > { %v1484_v31 = vsel %vm1184_vm9, %v3904_v30, 0.0 }
 0x370   : > { %1485 = vadd.xlane.f32.xlu1 %v1484_v31 }
 0x371   : > { %v1333_v33 = vpop.xlane.xlu1 %1332 }
 0x372   : > { %1381 = vrot.lane.b32.xlu0 %v3908_v32, %s3508_s11  ;;  %v1199_v34 = vpop.xlane.xlu0 %1198  ;;  %v1335_v39 = vsub.f32 %v1324_v62, %v1333_v33 }
 0x373   : > { %3259 = vrcp.f32 %v1199_v34  ;;  %v1214_v41 = vand.u32 2147483648, %v1199_v34  ;;  %v1212_v43 = vand.u32 2147483647, %v1199_v34  ;;  %vm1208_vm11 = vweird.f32 %v1199_v34 }
 0x374   : > { %v1338_v44 = vmul.f32 1.442695, %v1335_v39 }
 0x375   : > { %v1215_v46 = vor.u32 1.1754944e-38, %v1214_v41  ;;  %vm1213_vm13 = vcmp.eq.f32.partialorder %v1212_v43, 8.507059e+37 }
 0x379   : > { %v3260_v35 = vpop.eup %3259  ;;  %v1612_v36 = vpop.xlane.xlu1 %1611 }
 0x37a   : > { %v1204_v37 = vmul.f32 %v3260_v35, %v1199_v34  ;;  %v1616_v38 = vsub.f32 %v1583_v0, %v1612_v36  ;;  %vm1209_vm10 = vweird.f32 %v3260_v35 }
 0x37b   : > { %vm1210_vm12 = vmor %vm1208_vm11, %vm1209_vm10 }
 0x37c   : > { %v1205_v15 = vsub.f32 1.0, %v1204_v37  ;;  %v1618_v40 = vmul.f32 1.442695, %v1616_v38 }
 0x37e   : > { %v1206_v42 = vmul.f32 %v3260_v35, %v1205_v15  ;;  %3261 = vpow2.f32 %v1618_v40 }
 0x380   : > { %v1207_v45 = vadd.f32 %v3260_v35, %v1206_v42 }
 0x381   : > { %v1477_v56 = vpop.xlane.xlu2 %1476 }
 0x382   : > { %v1211_v47 = vsel %vm1210_vm12, %v3260_v35, %v1207_v45  ;;  %v1202_v48 = vpop.xlane.xlu1 %1201  ;;  %v1479_v12 = vsub.f32 %v3887_v8, %v1477_v56 }
 0x383   : > { %v1216_v50 = vsel %vm1213_vm13, %v1215_v46, %v1211_v47  ;;  %3263 = vrcp.f32 %v1202_v48  ;;  %v1228_v59 = vand.u32 2147483648, %v1202_v48  ;;  %v1226_v62 = vand.u32 2147483647, %v1202_v48 }
 0x384   : > { %v3913_v51 = vpop.eup %3261  ;;  %3265 = vpow2.f32 %v1338_v44  ;;  %v1231_v52 = vmul.f32 %v3881_v63, %v1216_v50  ;;  %vm1222_vm15 = vweird.f32 %v1202_v48  ;;  %v1482_v14 = vmul.f32 1.442695, %v1479_v12 }
 0x385   : > { %v1622_v53 = vsel %vm1184_vm9, %v3913_v51, 0.0  ;;  %v1229_v17 = vor.u32 1.1754944e-38, %v1228_v59  ;;  %vm1227_vm1 = vcmp.eq.f32.partialorder %v1226_v62, 8.507059e+37 }
 0x386   : > { %1623 = vadd.xlane.f32.xlu2 %v1622_v53  ;;  %v1233_v54 = vpack.c.bf16 %v1231_v52, %v1231_v52 }
 0x388   : > { %2735 = vmatmul.msk.bf16.vlgmr.msra.gmra.mxu3 %vm1184_vm9, %v1233_v54 }
 0x389   : > { %v3264_v13 = vpop.eup %3263  ;;  %1405 = vrot.lane.b32.xlu1 %v1404_v55, %s3508_s11 }
 0x38a   : > { %v3920_v28 = vpop.eup %3265  ;;  %v1218_v57 = vmul.f32 %v3264_v13, %v1202_v48  ;;  %vm1223_vm14 = vweird.f32 %v3264_v13 }
 0x38b   : > { %v1343_v60 = vsel %vm1184_vm9, %v3920_v28, 0.0  ;;  %vm1224_vm0 = vmor %vm1222_vm15, %vm1223_vm14 }
 0x38c   : > { %v1219_v58 = vsub.f32 1.0, %v1218_v57 }
 0x38e   : > { %v1220_v61 = vmul.f32 %v3264_v13, %v1219_v58  ;;  %1344 = vadd.xlane.f32.xlu2 %v1343_v60 }
 0x390   : > { %v1221_v63 = vadd.f32 %v3264_v13, %v1220_v61 }
 0x391   : > { %v1615_v0 = vpop.xlane.xlu2 %1614  ;;  %1543 = vrot.lane.b32.xlu1 %v1404_v55, %s3510_s8 }
 0x392   : > { %v1617_v1 = vsub.f32 %v3895_v16, %v1615_v0  ;;  %v1225_v2 = vsel %vm1224_vm0, %v3264_v13, %v1221_v63 }
 0x393   : > { %v1230_v3 = vsel %vm1227_vm1, %v1229_v17, %v1225_v2 }
 0x394   : > { %v1620_v4 = vmul.f32 1.442695, %v1617_v1  ;;  %v1232_v5 = vmul.f32 %v3889_v9, %v1230_v3 }
 0x396   : > { %3267 = vpow2.f32 %v1620_v4  ;;  %v1234_v6 = vpack.c.bf16 %v1232_v5, %v1232_v5 }
 0x397   : > { %3269 = vpow2.f32 %v1482_v14 }
 0x398   : > { %2736 = vmatmul.msk.bf16.vlgmr.msrb.gmra.mxu0 %vm1184_vm9, %v1234_v6 }
 0x399   : > { %1660 = vrot.lane.b32.xlu1 %v3908_v32, %s3509_s12 }
 0x39c   : > { %v3930_v7 = vpop.eup %3267 }
 0x39d   : > { %v1625_v11 = vsel %vm1184_vm9, %v3930_v7, 0.0  ;;  %v3937_v9 = vpop.eup %3269 }
 0x39e   : > { %1626 = vadd.xlane.f32.xlu0 %v1625_v11  ;;  %v1487_v16 = vsel %vm1184_vm9, %v3937_v9, 0.0 }
 0x3a6   : > { %1522 = vrot.lane.b32.xlu2 %v3908_v32, %s3510_s8 }
 0x3cf   : > { %1488 = vadd.xlane.f32.xlu2 %v1487_v16 }
 0x3d1   : > { %v1342_v18 = vpop.xlane.xlu0 %1341 }
 0x3d2   : > { %3271 = vrcp.f32 %v1342_v18  ;;  %v1357_v22 = vand.u32 2147483648, %v1342_v18  ;;  %v1355_v25 = vand.u32 2147483647, %v1342_v18  ;;  %vm1351_vm3 = vweird.f32 %v1342_v18 }
 0x3d4   : > { %v1358_v8 = vor.u32 1.1754944e-38, %v1357_v22  ;;  %vm1356_vm5 = vcmp.eq.f32.partialorder %v1355_v25, 8.507059e+37 }
 0x3d8   : > { %v3272_v19 = vpop.eup %3271 }
 0x3d9   : > { %v1347_v20 = vmul.f32 %v3272_v19, %v1342_v18  ;;  %vm1352_vm2 = vweird.f32 %v3272_v19 }
 0x3da   : > { %vm1353_vm4 = vmor %vm1351_vm3, %vm1352_vm2 }
 0x3db   : > { %v1348_v21 = vsub.f32 1.0, %v1347_v20 }
 0x3dd   : > { %v1349_v24 = vmul.f32 %v3272_v19, %v1348_v21 }
 0x3df   : > { %v1350_v26 = vadd.f32 %v3272_v19, %v1349_v24 }
 0x3e1   : > { %v1354_v27 = vsel %vm1353_vm4, %v3272_v19, %v1350_v26 }
 0x3e2   : > { %v1359_v29 = vsel %vm1356_vm5, %v1358_v8, %v1354_v27 }
 0x3e3   : > { %v1374_v31 = vmul.f32 %v3899_v23, %v1359_v29  ;;  %v1486_v34 = vpop.xlane.xlu1 %1485 }
 0x3e4   : > { %v1382_v32 = vpop.permute.xlu0 %1381  ;;  %3273 = vrcp.f32 %v1486_v34  ;;  %v1501_v42 = vand.u32 2147483648, %v1486_v34  ;;  %vm1495_vm10 = vweird.f32 %v1486_v34  ;;  %v1499_v44 = vand.u32 2147483647, %v1486_v34 }
 0x3e5   : > { %v1387_v33 = vsel %vm1238_vm8, %v1382_v32, 0  ;;  %v1376_v35 = vpack.c.bf16 %v1374_v31, %v1374_v31 }
 0x3e6   : > { %1396 = vmatpush.bf16.msrb.mxu3 %v1387_v33  ;;  %v1502_v48 = vor.u32 1.1754944e-38, %v1501_v42  ;;  %vm1500_vm12 = vcmp.eq.f32.partialorder %v1499_v44, 8.507059e+37 }
 0x3e7   : > { %1681 = vrot.lane.b32.xlu2 %v1404_v55, %s3509_s12 }
 0x3e9   : > { %2739 = vmatmul.msk.bf16.vlgmr.msrb.gmra.mxu3 %vm1184_vm9, %v1376_v35 }
 0x3ea   : > { %v3274_v36 = vpop.eup %3273 }
 0x3eb   : > { %v1491_v37 = vmul.f32 %v3274_v36, %v1486_v34  ;;  %vm1496_vm6 = vweird.f32 %v3274_v36 }
 0x3ec   : > { %vm1497_vm11 = vmor %vm1495_vm10, %vm1496_vm6 }
 0x3ed   : > { %v1492_v38 = vsub.f32 1.0, %v1491_v37 }
 0x3ef   : > { %v1493_v15 = vmul.f32 %v3274_v36, %v1492_v38 }
 0x3f1   : > { %v1494_v41 = vadd.f32 %v3274_v36, %v1493_v15 }
 0x3f3   : > { %v1498_v46 = vsel %vm1497_vm11, %v3274_v36, %v1494_v41 }
 0x3f4   : > { %v1503_v52 = vsel %vm1500_vm12, %v1502_v48, %v1498_v46 }
 0x3f5   : > { %v1518_v55 = vmul.f32 %v3904_v30, %v1503_v52 }
 0x3f7   : > { %v1520_v17 = vpack.c.bf16 %v1518_v55, %v1518_v55 }
 0x3f9   : > { %v1624_v39 = vpop.xlane.xlu2 %1623 }
 0x3fa   : > { %3275 = vrcp.f32 %v1624_v39  ;;  %v1639_v30 = vand.u32 2147483648, %v1624_v39  ;;  %vm1633_vm0 = vweird.f32 %v1624_v39  ;;  %v1637_v4 = vand.u32 2147483647, %v1624_v39 }
 0x3fb   : > { %v1406_v40 = vpop.permute.xlu1 %1405 }
 0x3fc   : > { %v1411_v23 = vsel %vm1238_vm8, %v1406_v40, 0  ;;  %v1640_v14 = vor.u32 1.1754944e-38, %v1639_v30  ;;  %vm1638_vm4 = vcmp.eq.f32.partialorder %v1637_v4, 8.507059e+37  ;;  %v3072_v30 = vld [vmem:[%s3693_s14 + $0x20] sm:$0xff]  ;;  %v3070_v4 = vld [vmem:[%s3693_s14 + $0x10] sm:$0xff] }
 0x3fd   : > { %1420 = vmatpush.bf16.msra.mxu0 %v1411_v23 }
 0x400   : > { %v3276_v43 = vpop.eup %3275 }
 0x401   : > { %v1345_v45 = vpop.xlane.xlu2 %1344  ;;  %v1629_v47 = vmul.f32 %v3276_v43, %v1624_v39  ;;  %vm1634_vm14 = vweird.f32 %v3276_v43 }
 0x402   : > { %3277 = vrcp.f32 %v1345_v45  ;;  %v1371_v62 = vand.u32 2147483648, %v1345_v45  ;;  %v1369_v1 = vand.u32 2147483647, %v1345_v45  ;;  %vm1365_vm15 = vweird.f32 %v1345_v45  ;;  %vm1635_vm2 = vmor %vm1633_vm0, %vm1634_vm14 }
 0x403   : > { %v1544_v49 = vpop.permute.xlu1 %1543  ;;  %v1630_v53 = vsub.f32 1.0, %v1629_v47 }
 0x404   : > { %v1549_v50 = vsel %vm1238_vm8, %v1544_v49, 0  ;;  %v1372_v5 = vor.u32 1.1754944e-38, %v1371_v62  ;;  %vm1370_vm3 = vcmp.eq.f32.partialorder %v1369_v1, 8.507059e+37  ;;  %v3074_v1 = vld [vmem:[%s3693_s14 + $0x30] sm:$0xff] }
 0x405   : > { %1558 = vmatpush.bf16.msrb.mxu0 %v1549_v50  ;;  %v1631_v57 = vmul.f32 %v3276_v43, %v1630_v53 }
 0x407   : > { %v1632_v2 = vadd.f32 %v3276_v43, %v1631_v57 }
 0x408   : > { %v3278_v54 = vpop.eup %3277 }
 0x409   : > { %v1361_v13 = vmul.f32 %v3278_v54, %v1345_v45  ;;  %v1523_v56 = vpop.permute.xlu2 %1522  ;;  %vm1366_vm13 = vweird.f32 %v3278_v54  ;;  %v1636_v11 = vsel %vm1635_vm2, %v3276_v43, %v1632_v2  ;;  %v3073_v2 = vld [vmem:[%s3693_s14 + $0x28] sm:$0xff] }
 0x40a   : > { %v1528_v58 = vsel %vm1238_vm8, %v1523_v56, 0  ;;  %vm1367_vm1 = vmor %vm1365_vm15, %vm1366_vm13  ;;  %v1641_v19 = vsel %vm1638_vm4, %v1640_v14, %v1636_v11  ;;  %vm1731_vm15 = vcmask 785408  }
 0x40b   : > { %v1362_v59 = vsub.f32 1.0, %v1361_v13  ;;  %v1661_v60 = vpop.permute.xlu1 %1660  ;;  %v3949_v61 = vpop.f32.mrf.mxu3  ;;  %1537 = vmatpush.bf16.msra.mxu3 %v1528_v58  ;;  %v1656_v22 = vmul.f32 %v3913_v51, %v1641_v19 }
 0x40c   : > { %v1666_v63 = vsel %vm1238_vm8, %v1661_v60, 0 }
 0x40d   : > { %v1363_v0 = vmul.f32 %v3278_v54, %v1362_v59  ;;  %v1658_v24 = vpack.c.bf16 %v1656_v22, %v1656_v22 }
 0x40e   : > { %2743 = vmatmul.msk.bf16.vlgmr.msra.gmra.mxu3 %vm1184_vm9, %v1520_v17 }
 0x40f   : > { %1675 = vmatpush.bf16.msrb.mxu3 %v1666_v63  ;;  %v1364_v3 = vadd.f32 %v3278_v54, %v1363_v0  ;;  %v3075_v0 = vld [vmem:[%s3693_s14 + $0x38] sm:$0xff] }
 0x410   : > { %1786 = vmatpush.bf16.msrb.mxu1 %v3075_v0  ;;  %v2889_v0 = vld [vmem:[%s3699_s24 + $0xd8] sm:$0xf0] }
 0x411   : > { %v1368_v6 = vsel %vm1367_vm1, %v3278_v54, %v1364_v3  ;;  %v1627_v26 = vpop.xlane.xlu0 %1626  ;;  %v3071_v3 = vld [vmem:[%s3693_s14 + $0x18] sm:$0xff] }
 0x412   : > { %v1373_v12 = vsel %vm1370_vm3, %v1372_v5, %v1368_v6  ;;  %3279 = vrcp.f32 %v1627_v26  ;;  %v1653_v44 = vand.u32 2147483648, %v1627_v26  ;;  %vm1647_vm12 = vweird.f32 %v1627_v26  ;;  %v3069_v5 = vld [vmem:[%s3693_s14 + $0x8] sm:$0xff]  ;;  %v3068_v6 = vld [vmem:[%s3693_s14] sm:$0xff] }
 0x413   : > { %v1375_v16 = vmul.f32 %v3920_v28, %v1373_v12  ;;  %v1253_v18 = vpop.f32.mrf.mxu3  ;;  %v1651_v45 = vand.u32 2147483647, %v1627_v26 }
 0x414   : > { %v1654_v47 = vor.u32 1.1754944e-38, %v1653_v44  ;;  %1787 = vmatpush.bf16.msrb.mxu1 %v3074_v1  ;;  %v2895_v44 = vld [vmem:[%s3699_s24 + $0xe0] sm:$0xf] }
 0x415   : > { %v3954_v20 = vpop.f32.mrf.mxu0  ;;  %v1377_v21 = vpack.c.bf16 %v1375_v16, %v1375_v16  ;;  %vm1652_vm14 = vcmp.eq.f32.partialorder %v1651_v45, 8.507059e+37  ;;  %v3106_v45 = vld [vmem:[%s3699_s24 + $0xec] sm:$0xf0] }
 0x417   : > { %2740 = vmatmul.msk.bf16.vlgmr.msra.gmra.mxu0 %vm1184_vm9, %v1377_v21 }
 0x418   : > { %v3280_v27 = vpop.eup %3279  ;;  %1788 = vmatpush.bf16.msrb.mxu1 %v3073_v2  ;;  %v2863_v2 = vld [vmem:[%s3699_s24 + $0xa0] sm:$0xf] }
 0x419   : > { %v1643_v33 = vmul.f32 %v3280_v27, %v1627_v26 }
 0x41b   : > { %v1644_v37 = vsub.f32 1.0, %v1643_v33 }
 0x41c   : > { %1789 = vmatpush.bf16.msrb.mxu1 %v3072_v30  ;;  %v3098_v30 = vld [vmem:[%s3699_s24 + $0xac] sm:$0xf0] }
 0x41d   : > { %v1272_v25 = vpop.f32.mrf.mxu0  ;;  %v1645_v23 = vmul.f32 %v3280_v27, %v1644_v37 }
 0x41e   : > { %2747 = vmatmul.msk.bf16.vlgmr.msrb.gmra.mxu3 %vm1184_vm9, %v1658_v24 }
 0x41f   : > { %v1646_v43 = vadd.f32 %v3280_v27, %v1645_v23 }
 0x420   : > { %1790 = vmatpush.bf16.msrb.mxu1 %v3071_v3  ;;  %v3096_v3 = vld [vmem:[%s3699_s24 + $0xa4] sm:$0xf] }
 0x424   : > { %1791 = vmatpush.bf16.msrb.mxu1 %v3070_v4  ;;  %v2864_v4 = vor.u32 %v3098_v30, %v2863_v2  ;;  %v2809_v2 = vld [vmem:[%s3699_s24 + $0x38] sm:$0xf0]  ;;  %v2783_v30 = vld [vmem:[%s3699_s24] sm:$0xf] }
 0x428   : > { %1792 = vmatpush.bf16.msrb.mxu1 %v3069_v5  ;;  %v2865_v5 = vld [vmem:[%s3699_s24 + $0xb0] sm:$0xf0] }
 0x42c   : > { %1793 = vmatpush.bf16.msrb.mxu1 %v3068_v6  ;;  %v2871_v6 = vld [vmem:[%s3699_s24 + $0xa8] sm:$0xf] }
 0x442   : > { %v1489_v8 = vpop.xlane.xlu2 %1488 }
 0x443   : > { %3281 = vrcp.f32 %v1489_v8  ;;  %v1515_v35 = vand.u32 2147483648, %v1489_v8  ;;  %v1513_v51 = vand.u32 2147483647, %v1489_v8  ;;  %vm1509_vm6 = vweird.f32 %v1489_v8 }
 0x445   : > { %v1516_v39 = vor.u32 1.1754944e-38, %v1515_v35  ;;  %vm1514_vm11 = vcmp.eq.f32.partialorder %v1513_v51, 8.507059e+37  ;;  %v3320_v51 = vld [vmem:[%s4223_s5 + $0x8] sm:$0xff] }
 0x449   : > { %v3282_v28 = vpop.eup %3281 }
 0x44a   : > { %v1505_v29 = vmul.f32 %v3282_v28, %v1489_v8  ;;  %v1682_v31 = vpop.permute.xlu2 %1681  ;;  %vm1510_vm5 = vweird.f32 %v3282_v28 }
 0x44b   : > { %v1687_v32 = vsel %vm1238_vm8, %v1682_v31, 0  ;;  %vm1511_vm10 = vmor %vm1509_vm6, %vm1510_vm5  ;;  %vm1648_vm8 = vweird.f32 %v3280_v27 }
 0x44c   : > { %v1506_v34 = vsub.f32 1.0, %v1505_v29  ;;  %1696 = vmatpush.bf16.msra.mxu0 %v1687_v32  ;;  %vm1649_vm13 = vmor %vm1647_vm12, %vm1648_vm8  ;;  %v3241_v32 = vld [vmem:[%s4226_s4] ss:$0 sm:$0xff] }
 0x44d   : > { %v1650_v46 = vsel %vm1649_vm13, %v3280_v27, %v1646_v43 }
 0x44e   : > { %v1507_v36 = vmul.f32 %v3282_v28, %v1506_v34  ;;  %v1655_v48 = vsel %vm1652_vm14, %v1654_v47, %v1650_v46  ;;  %v3104_v46 = vld [vmem:[%s3699_s24 + $0xe4] sm:$0xf]  ;;  %v2896_v47 = vor.u32 %v3106_v45, %v2895_v44  ;;  %v2815_v45 = vld [vmem:[%s3699_s24 + $0x40] sm:$0xf] }
 0x44f   : > { %v1657_v49 = vmul.f32 %v3930_v7, %v1655_v48  ;;  %v2897_v48 = vld [vmem:[%s3699_s24 + $0xf0] sm:$0xf0] }
 0x450   : > { %v1508_v38 = vadd.f32 %v3282_v28, %v1507_v36  ;;  %2022 = vmatpush.bf16.msrb.mxu2 %v2896_v47  ;;  %v3084_v47 = vld [vmem:[%s3699_s24 + $0x44] sm:$0xf] }
 0x451   : > { %v1659_v50 = vpack.c.bf16 %v1657_v49, %v1657_v49  ;;  %v2903_v49 = vld [vmem:[%s3699_s24 + $0xe8] sm:$0xf] }
 0x452   : > { %v1512_v15 = vsel %vm1511_vm10, %v3282_v28, %v1508_v38 }
 0x453   : > { %v1517_v40 = vsel %vm1514_vm11, %v1516_v39, %v1512_v15 }
 0x454   : > { %v1519_v41 = vmul.f32 %v3937_v9, %v1517_v40 }
 0x456   : > { %v1521_v42 = vpack.c.bf16 %v1519_v41, %v1519_v41 }
 0x458   : > { %2744 = vmatmul.msk.bf16.vlgmr.msrb.gmra.mxu0 %vm1184_vm9, %v1521_v42 }
 0x468   : > { %2748 = vmatmul.msk.bf16.vlgmr.msra.gmra.mxu0 %vm1184_vm9, %v1659_v50  ;;  %vm1728_vm9 = vcmask 523264   ;;  %v3107_v50 = vld [vmem:[%s3699_s24 + $0xf4] sm:$0xf0] }
 0x46c   : > { %v1398_v52 = vpop.f32.mrf.mxu3 }
 0x474   : > { %v1400_v9 = vpop.f32.mrf.mxu3 }
 0x475   : > { %v2904_v9 = vor.u32 %v3107_v50, %v2903_v49  ;;  %v2817_v49 = vld [vmem:[%s3699_s24 + $0x50] sm:$0xf0]  ;;  %v2823_v50 = vld [vmem:[%s3699_s24 + $0x48] sm:$0xf] }
 0x477   : > { %2050 = vmatpush.bf16.msrb.mxu0 %v2904_v9  ;;  %v2820_v9 = vor.u32 %v3084_v47, %v2817_v49  ;;  %v3139_v49 = vld [vmem:[%s3701_s17 + $0xf8] sm:$0xff] }
 0x491   : > { %v1539_v53 = vpop.f32.mrf.mxu3 }
 0x494   : > { %v1422_v54 = vpop.f32.mrf.mxu0 }
 0x495   : > { %v3224_v55 = vpack.i.bf16 %v1422_v54, %v1398_v52  ;;  %v2900_v52 = vor.u32 %v3104_v46, %v2897_v48  ;;  %v2905_v54 = vld [vmem:[%s3699_s24 + $0xf8] sm:$0xf0]  ;;  %v3086_v46 = vld [vmem:[%s3699_s24 + $0x4c] sm:$0xf0] }
 0x496   : > { %v2816_v48 = vor.u32 %v3086_v46, %v2815_v45 }
 0x497   : > { %3225 = vrot.lane.b32.xlu1 %v3224_v55, %s3509_s12  ;;  %2036 = vmatpush.bf16.msra.mxu3 %v2900_v52  ;;  %v3087_v52 = vld [vmem:[%s3699_s24 + $0x54] sm:$0xf0] }
 0x499   : > { %v1541_v13 = vpop.f32.mrf.mxu3 }
 0x49a   : > { %v2879_v13 = vld [vmem:[%s3699_s24 + $0xc0] sm:$0xf] }
 0x49c   : > { %v1424_v56 = vpop.f32.mrf.mxu0 }
 0x49d   : > { %v3102_v56 = vld [vmem:[%s3699_s24 + $0xcc] sm:$0xf0] }
 0x4a1   : > { %v1677_v57 = vpop.f32.mrf.mxu3 }
 0x4a9   : > { %v1679_v58 = vpop.f32.mrf.mxu3 }
 0x4aa   : > { %v2880_v58 = vor.u32 %v3102_v56, %v2879_v13  ;;  %v2799_v56 = vld [vmem:[%s3699_s24 + $0x20] sm:$0xf] }
 0x4ac   : > { %2023 = vmatpush.bf16.msrb.mxu2 %v2880_v58  ;;  %v3080_v58 = vld [vmem:[%s3699_s24 + $0x24] sm:$0xf] }
 0x4b0   : > { %2024 = vmatpush.bf16.msrb.mxu2 %v2864_v4 }
 0x4d5   : > { %v1560_v59 = vpop.f32.mrf.mxu0 }
 0x4d6   : > { %v3229_v7 = vpack.i.bf16 %v1560_v59, %v1539_v53  ;;  %v3105_v53 = vld [vmem:[%s3699_s24 + $0xec] sm:$0xf]  ;;  %v2881_v59 = vld [vmem:[%s3699_s24 + $0xd0] sm:$0xf0] }
 0x4d7   : > { %v2908_v55 = vor.u32 %v3105_v53, %v2905_v54  ;;  %v2824_v53 = vor.u32 %v3087_v52, %v2823_v50  ;;  %v3085_v54 = vld [vmem:[%s3699_s24 + $0x4c] sm:$0xf]  ;;  %v3130_v50 = vld [vmem:[%s3701_s17 + $0xb0] sm:$0xff] }
 0x4d8   : > { %3230 = vrot.lane.b32.xlu2 %v3229_v7, %s3510_s8  ;;  %v2887_v7 = vld [vmem:[%s3699_s24 + $0xc8] sm:$0xf]  ;;  %v3138_v52 = vld [vmem:[%s3701_s17 + $0xf0] sm:$0xff] }
 0x4d9   : > { %2064 = vmatpush.bf16.msra.mxu1 %v2908_v55  ;;  %v2825_v55 = vld [vmem:[%s3699_s24 + $0x58] sm:$0xf0] }
 0x4da   : > { %v2828_v13 = vor.u32 %v3085_v54, %v2825_v55  ;;  %v3129_v54 = vld [vmem:[%s3701_s17 + $0xa8] sm:$0xff] }
 0x4db   : > { %v3137_v55 = vld [vmem:[%s3701_s17 + $0xe8] sm:$0xff] }
 0x4dd   : > { %v1562_v60 = vpop.f32.mrf.mxu0 }
 0x4de   : > { %v3103_v60 = vld [vmem:[%s3699_s24 + $0xd4] sm:$0xf0] }
 0x4e5   : > { %v1698_v62 = vpop.f32.mrf.mxu0 }
 0x4e6   : > { %v3234_v63 = vpack.i.bf16 %v1698_v62, %v1677_v57  ;;  %v3100_v57 = vld [vmem:[%s3699_s24 + $0xc4] sm:$0xf] }
 0x4e7   : > { %v2884_v62 = vor.u32 %v3100_v57, %v2881_v59  ;;  %v3082_v57 = vld [vmem:[%s3699_s24 + $0x2c] sm:$0xf0] }
 0x4e8   : > { %3235 = vrot.lane.b32.xlu1 %v3234_v63, %s3508_s11  ;;  %v2888_v63 = vor.u32 %v3103_v60, %v2887_v7  ;;  %v2800_v59 = vor.u32 %v3082_v57, %v2799_v56  ;;  %v2801_v7 = vld [vmem:[%s3699_s24 + $0x30] sm:$0xf0]  ;;  %v2807_v60 = vld [vmem:[%s3699_s24 + $0x28] sm:$0xf]  ;;  %v3128_v57 = vld [vmem:[%s3701_s17 + $0xa0] sm:$0xff] }
 0x4e9   : > { %2037 = vmatpush.bf16.msra.mxu3 %v2884_v62  ;;  %v3083_v62 = vld [vmem:[%s3699_s24 + $0x34] sm:$0xf0]  ;;  %v3122_v56 = vld [vmem:[%s3701_s17 + $0x70] sm:$0xff] }
 0x4ea   : > { %2051 = vmatpush.bf16.msrb.mxu0 %v2888_v63 }
 0x4ed   : > { %v1700_v17 = vpop.f32.mrf.mxu0 }
 0x4ee   : > { %v3101_v17 = vld [vmem:[%s3699_s24 + $0xcc] sm:$0xf] }
 0x4ef   : > { %v2892_v1 = vor.u32 %v3101_v17, %v2889_v0  ;;  %v2804_v17 = vor.u32 %v3080_v58, %v2801_v7  ;;  %v2808_v0 = vor.u32 %v3083_v62, %v2807_v60  ;;  %v3136_v58 = vld [vmem:[%s3701_s17 + $0xe0] sm:$0xff]  ;;  %v3121_v7 = vld [vmem:[%s3701_s17 + $0x68] sm:$0xff]  ;;  %v3127_v60 = vld [vmem:[%s3701_s17 + $0x98] sm:$0xff] }
 0x4f0   : > { %v3135_v62 = vld [vmem:[%s3701_s17 + $0xd8] sm:$0xff] }
 0x4f1   : > { %2065 = vmatpush.bf16.msra.mxu1 %v2892_v1  ;;  %v3081_v1 = vld [vmem:[%s3699_s24 + $0x2c] sm:$0xf] }
 0x4f2   : > { %v2812_v4 = vor.u32 %v3081_v1, %v2809_v2  ;;  %v3134_v1 = vld [vmem:[%s3701_s17 + $0xd0] sm:$0xff]  ;;  %v836_v2 = vld [vmem:[%s3741_s26] sm:$0xf] }
 0x509   : > { %v3226_v11 = vpop.permute.xlu1 %3225 }
 0x50a   : > { %v3228_v14 = vunpack.i.h.bf16 %v3226_v11  ;;  %v3227_v16 = vunpack.i.l.bf16 %v3226_v11  ;;  %v3099_v11 = vld [vmem:[%s3699_s24 + $0xb4] sm:$0xf0] }
 0x50c   : > { %v1727_v22 = vsel %vm1145_vm7, %v3954_v20, %v3228_v14  ;;  %v1726_v24 = vsel %vm1145_vm7, %v3949_v61, %v3227_v16  ;;  %v3319_v20 = vld [vmem:[%s4223_s5] sm:$0xff]  ;;  %v2872_v14 = vor.u32 %v3099_v11, %v2871_v6  ;;  %v3097_v16 = vld [vmem:[%s3699_s24 + $0xac] sm:$0xf]  ;;  %v2785_v11 = vld [vmem:[%s3699_s24 + $0x10] sm:$0xf0] }
 0x50d   : > { %v3076_v6 = vld [vmem:[%s3699_s24 + $0x4] sm:$0xf] }
 0x50e   : > { %2052 = vmatpush.bf16.msrb.mxu0 %v2872_v14  ;;  %v2788_v14 = vor.u32 %v3076_v6, %v2785_v11  ;;  %v3125_v6 = vld [vmem:[%s3701_s17 + $0x88] sm:$0xff] }
 0x50f   : > { %v3133_v11 = vld [vmem:[%s3701_s17 + $0xc8] sm:$0xff] }
 0x532   : > { %v3231_v12 = vpop.permute.xlu2 %3230 }
 0x533   : > { %v3233_v18 = vunpack.i.h.bf16 %v3231_v12  ;;  %v3232_v19 = vunpack.i.l.bf16 %v3231_v12  ;;  %v2868_v12 = vor.u32 %v3096_v3, %v2865_v5  ;;  %v3078_v5 = vld [vmem:[%s3699_s24 + $0xc] sm:$0xf0] }
 0x535   : > { %v1730_v8 = vsel %vm1728_vm9, %v1727_v22, %v3233_v18  ;;  %v1729_v27 = vsel %vm1728_vm9, %v1726_v24, %v3232_v19  ;;  %v2873_v18 = vld [vmem:[%s3699_s24 + $0xb8] sm:$0xf0]  ;;  %2038 = vmatpush.bf16.msra.mxu3 %v2868_v12  ;;  %v3094_v22 = vld [vmem:[%s3699_s24 + $0x8c] sm:$0xf0]  ;;  %v3092_v24 = vld [vmem:[%s3699_s24 + $0x84] sm:$0xf]  ;;  %v2784_v12 = vor.u32 %v3078_v5, %v2783_v30 }
 0x536   : > { %v2876_v19 = vor.u32 %v3097_v16, %v2873_v18  ;;  %v2791_v16 = vld [vmem:[%s3699_s24 + $0x8] sm:$0xf]  ;;  %v3079_v18 = vld [vmem:[%s3699_s24 + $0x14] sm:$0xf0]  ;;  %v1857_v5 = vperm.slane %v836_v2, 3 }
 0x537   : > { %v3111_v30 = vld [vmem:[%s3701_s17 + $0x18] sm:$0xff] }
 0x538   : > { %2066 = vmatpush.bf16.msra.mxu1 %v2876_v19  ;;  %v3077_v19 = vld [vmem:[%s3699_s24 + $0xc] sm:$0xf] }
 0x55a   : > { %v3236_v21 = vpop.permute.xlu1 %3235 }
 0x55b   : > { %v3238_v25 = vunpack.i.h.bf16 %v3236_v21  ;;  %v3237_v26 = vunpack.i.l.bf16 %v3236_v21  ;;  %v2847_v21 = vld [vmem:[%s3699_s24 + $0x80] sm:$0xf] }
 0x55d   : > { %v1733_v28 = vsel %vm1731_vm15, %v1730_v8, %v3238_v25  ;;  %v1732_v29 = vsel %vm1731_vm15, %v1729_v27, %v3237_v26  ;;  %v2848_v25 = vor.u32 %v3094_v22, %v2847_v21  ;;  %v2849_v26 = vld [vmem:[%s3699_s24 + $0x90] sm:$0xf0]  ;;  %v2855_v8 = vld [vmem:[%s3699_s24 + $0x88] sm:$0xf]  ;;  %v3095_v27 = vld [vmem:[%s3699_s24 + $0x94] sm:$0xf0]  ;;  %v2792_v22 = vor.u32 %v3079_v18, %v2791_v16 }
 0x55e   : > { %v1734_v31 = vpack.c.bf16 %v1733_v28, %v1732_v29  ;;  %v2852_v28 = vor.u32 %v3092_v24, %v2849_v26  ;;  %v2856_v29 = vor.u32 %v3095_v27, %v2855_v8  ;;  %v2793_v24 = vld [vmem:[%s3699_s24 + $0x18] sm:$0xf0] }
 0x55f   : > { %2025 = vmatpush.bf16.msrb.mxu2 %v2848_v25  ;;  %v2796_v25 = vor.u32 %v3077_v19, %v2793_v24  ;;  %v3132_v24 = vld [vmem:[%s3701_s17 + $0xc0] sm:$0xff] }
 0x560   : > { %1794 = vmatmul.bf16.vlgmr.msrb.gmra.mxu1 %v1734_v31  ;;  %v3093_v31 = vld [vmem:[%s3699_s24 + $0x8c] sm:$0xf]  ;;  %2039 = vmatpush.bf16.msra.mxu3 %v2852_v28 }
 0x561   : > { %2053 = vmatpush.bf16.msrb.mxu0 %v2856_v29 }
 0x5dd   : > { %v1795_v33 = vpop.f32.mrf.mxu1 }
 0x5de   : > { %v1796_v34 = vadd.f32 %v3241_v32, %v1795_v33 }
 0x5e0   : > { %v3987_v61 = vadd.f32 %v3319_v20, %v1796_v34  ;;  %v2831_v34 = vld [vmem:[%s3699_s24 + $0x60] sm:$0xf]  ;;  %v3090_v20 = vld [vmem:[%s3699_s24 + $0x6c] sm:$0xf0] }
 0x5e2   : > { %1802 = vadd.xlane.f32.xlu2 %v3987_v61 }
 0x5e5   : > { %v1797_v35 = vpop.f32.mrf.mxu1 }
 0x5e6   : > { %v1798_v36 = vadd.f32 %v3241_v32, %v1797_v35  ;;  %v2857_v32 = vld [vmem:[%s3699_s24 + $0x98] sm:$0xf0]  ;;  %v3088_v35 = vld [vmem:[%s3699_s24 + $0x64] sm:$0xf] }
 0x5e7   : > { %v2860_v33 = vor.u32 %v3093_v31, %v2857_v32 }
 0x5e8   : > { %v3993_v37 = vadd.f32 %v3320_v51, %v1798_v36  ;;  %v2832_v36 = vor.u32 %v3090_v20, %v2831_v34  ;;  %v2833_v51 = vld [vmem:[%s3699_s24 + $0x70] sm:$0xf0] }
 0x5e9   : > { %2067 = vmatpush.bf16.msra.mxu1 %v2860_v33 }
 0x5ea   : > { %1804 = vadd.xlane.f32.xlu0 %v3993_v37  ;;  %2026 = vmatpush.bf16.msrb.mxu2 %v2832_v36 }
 0x5ee   : > { %2027 = vmatpush.bf16.msrb.mxu2 %v2816_v48 }
 0x5f2   : > { %2028 = vmatpush.bf16.msrb.mxu2 %v2800_v59  ;;  %v3113_v59 = vld [vmem:[%s3701_s17 + $0x28] sm:$0xff] }
 0x5f6   : > { %2029 = vmatpush.bf16.msrb.mxu2 %v2784_v12  ;;  %v3110_v12 = vld [vmem:[%s3701_s17 + $0x10] sm:$0xff] }
 0x655   : > { %v1803_v38 = vpop.xlane.xlu2 %1802 }
 0x656   : > { %v1806_v39 = vmul.f32 %v1803_v38, %v3766_v10  ;;  %v2839_v38 = vld [vmem:[%s3699_s24 + $0x68] sm:$0xf] }
 0x658   : > { %v3998_v15 = vsub.f32 %v3987_v61, %v1806_v39  ;;  %v3091_v39 = vld [vmem:[%s3699_s24 + $0x74] sm:$0xf0] }
 0x65a   : > { %v1810_v40 = vmul.f32 %v3998_v15, %v3998_v15 }
 0x65c   : > { %1812 = vadd.xlane.f32.xlu1 %v1810_v40  ;;  %v2836_v40 = vor.u32 %v3088_v35, %v2833_v51 }
 0x65d   : > { %v1805_v23 = vpop.xlane.xlu0 %1804 }
 0x65e   : > { %v1807_v41 = vmul.f32 %v1805_v23, %v3766_v10  ;;  %v2840_v23 = vor.u32 %v3091_v39, %v2839_v38  ;;  %2040 = vmatpush.bf16.msra.mxu3 %v2836_v40  ;;  %v3242_v40 = vld [vmem:[%s722_s21] ss:$0 sm:$0xff] }
 0x660   : > { %v4004_v42 = vsub.f32 %v3993_v37, %v1807_v41  ;;  %v3089_v41 = vld [vmem:[%s3699_s24 + $0x6c] sm:$0xf]  ;;  %2054 = vmatpush.bf16.msrb.mxu0 %v2840_v23 }
 0x662   : > { %v1811_v43 = vmul.f32 %v4004_v42, %v4004_v42  ;;  %2041 = vmatpush.bf16.msra.mxu3 %v2820_v9  ;;  %v3115_v9 = vld [vmem:[%s3701_s17 + $0x38] sm:$0xff] }
 0x663   : > { %2325 = vmatpush.bf16.msra.mxu2 %v3115_v9 }
 0x664   : > { %1814 = vadd.xlane.f32.xlu0 %v1811_v43  ;;  %v2841_v43 = vld [vmem:[%s3699_s24 + $0x78] sm:$0xf0]  ;;  %2055 = vmatpush.bf16.msrb.mxu0 %v2824_v53 }
 0x665   : > { %v2844_v44 = vor.u32 %v3089_v41, %v2841_v43  ;;  %v3123_v53 = vld [vmem:[%s3701_s17 + $0x78] sm:$0xff] }
 0x666   : > { %2042 = vmatpush.bf16.msra.mxu3 %v2804_v17  ;;  %v3120_v17 = vld [vmem:[%s3701_s17 + $0x60] sm:$0xff] }
 0x667   : > { %2068 = vmatpush.bf16.msra.mxu1 %v2844_v44 }
 0x668   : > { %2056 = vmatpush.bf16.msrb.mxu0 %v2808_v0  ;;  %v3126_v0 = vld [vmem:[%s3701_s17 + $0x90] sm:$0xff] }
 0x66a   : > { %2043 = vmatpush.bf16.msra.mxu3 %v2788_v14  ;;  %v3118_v14 = vld [vmem:[%s3701_s17 + $0x50] sm:$0xff] }
 0x66b   : > { %2069 = vmatpush.bf16.msra.mxu1 %v2828_v13  ;;  %v3114_v13 = vld [vmem:[%s3701_s17 + $0x30] sm:$0xff] }
 0x66c   : > { %2057 = vmatpush.bf16.msrb.mxu0 %v2792_v22  ;;  %2326 = vmatpush.bf16.msra.mxu2 %v3114_v13  ;;  %v3124_v22 = vld [vmem:[%s3701_s17 + $0x80] sm:$0xff] }
 0x66e   : > { %2339 = vmatpush.bf16.msrb.mxu3 %v3123_v53 }
 0x66f   : > { %2070 = vmatpush.bf16.msra.mxu1 %v2812_v4  ;;  %v1856_v4 = vperm.slane %v836_v2, 2 }
 0x670   : > { %2327 = vmatpush.bf16.msra.mxu2 %v3113_v59 }
 0x672   : > { %2340 = vmatpush.bf16.msrb.mxu3 %v3122_v56 }
 0x673   : > { %2071 = vmatpush.bf16.msra.mxu1 %v2796_v25  ;;  %v1854_v25 = vperm.slane %v836_v2, 0 }
 0x676   : > { %2341 = vmatpush.bf16.msrb.mxu3 %v3121_v7 }
 0x677   : > { %2367 = vmatpush.bf16.msrb.mxu1 %v3139_v49 }
 0x67a   : > { %2342 = vmatpush.bf16.msrb.mxu3 %v3120_v17 }
 0x67b   : > { %2368 = vmatpush.bf16.msrb.mxu1 %v3138_v52 }
 0x67f   : > { %2369 = vmatpush.bf16.msrb.mxu1 %v3137_v55 }
 0x683   : > { %2370 = vmatpush.bf16.msrb.mxu1 %v3136_v58 }
 0x687   : > { %2371 = vmatpush.bf16.msrb.mxu1 %v3135_v62 }
 0x68b   : > { %2372 = vmatpush.bf16.msrb.mxu1 %v3134_v1 }
 0x68f   : > { %2373 = vmatpush.bf16.msrb.mxu1 %v3133_v11 }
 0x693   : > { %2374 = vmatpush.bf16.msrb.mxu1 %v3132_v24 }
 0x6cf   : > { %v1813_v63 = vpop.xlane.xlu1 %1812 }
 0x6d0   : > { %v1816_v3 = vmul.f32 %v1813_v63, %v3766_v10  ;;  %v3112_v63 = vld [vmem:[%s3701_s17 + $0x20] sm:$0xff] }
 0x6d1   : > { %2328 = vmatpush.bf16.msra.mxu2 %v3112_v63 }
 0x6d2   : > { %v1818_v21 = vadd.f32 1e-12, %v1816_v3  ;;  %v3119_v3 = vld [vmem:[%s3701_s17 + $0x58] sm:$0xff] }
 0x6d3   : > { %2343 = vmatpush.bf16.msrb.mxu3 %v3119_v3 }
 0x6d4   : > { %3283 = vrsqrt.f32 %v1818_v21  ;;  %vm1826_vm0 = vweird.f32 %v1818_v21 }
 0x6d5   : > { %2329 = vmatpush.bf16.msra.mxu2 %v3111_v30 }
 0x6d7   : > { %v1815_v26 = vpop.xlane.xlu0 %1814  ;;  %2344 = vmatpush.bf16.msrb.mxu3 %v3118_v14 }
 0x6d8   : > { %v1817_v8 = vmul.f32 %v1815_v26, %v3766_v10  ;;  %v1855_v26 = vperm.slane %v836_v2, 1 }
 0x6d9   : > { %2330 = vmatpush.bf16.msra.mxu2 %v3110_v12 }
 0x6da   : > { %v3284_v27 = vpop.eup %3283  ;;  %v1819_v28 = vadd.f32 1e-12, %v1817_v8 }
 0x6db   : > { %v1821_v29 = vmul.f32 %v3284_v27, %v1818_v21  ;;  %vm1827_vm7 = vweird.f32 %v3284_v27 }
 0x6dc   : > { %3285 = vrsqrt.f32 %v1819_v28  ;;  %vm1828_vm1 = vmor %vm1826_vm0, %vm1827_vm7  ;;  %vm1836_vm3 = vweird.f32 %v1819_v28 }
 0x6dd   : > { %v1822_v31 = vmul.f32 %v3284_v27, %v1821_v29 }
 0x6df   : > { %v1823_v32 = vmul.f32 0.5, %v1822_v31 }
 0x6e1   : > { %v1824_v33 = vsub.f32 1.5, %v1823_v32 }
 0x6e2   : > { %v3286_v34 = vpop.eup %3285 }
 0x6e3   : > { %v1825_v20 = vmul.f32 %v3284_v27, %v1824_v33  ;;  %v1831_v35 = vmul.f32 %v3286_v34, %v1819_v28  ;;  %vm1837_vm2 = vweird.f32 %v3286_v34  ;;  %v3117_v28 = vld [vmem:[%s3701_s17 + $0x48] sm:$0xff] }
 0x6e4   : > { %vm1838_vm4 = vmor %vm1836_vm3, %vm1837_vm2  ;;  %2345 = vmatpush.bf16.msrb.mxu3 %v3117_v28 }
 0x6e5   : > { %v1832_v36 = vmul.f32 %v3286_v34, %v1831_v35  ;;  %v1829_v51 = vsel %vm1828_vm1, %v3284_v27, %v1825_v20  ;;  %v3109_v27 = vld [vmem:[%s3701_s17 + $0x8] sm:$0xff]  ;;  %v3108_v35 = vld [vmem:[%s3701_s17] sm:$0xff] }
 0x6e6   : > { %v1840_v10 = vmul.f32 %v1829_v51, %v3998_v15  ;;  %v3243_v15 = vld [vmem:[%s725_s0] ss:$0 sm:$0xff]  ;;  %2331 = vmatpush.bf16.msra.mxu2 %v3109_v27 }
 0x6e7   : > { %v1833_v38 = vmul.f32 0.5, %v1832_v36  ;;  %v3116_v36 = vld [vmem:[%s3701_s17 + $0x40] sm:$0xff] }
 0x6e8   : > { %v1845_v44 = vmul.f32 %v3242_v40, %v1840_v10  ;;  %2346 = vmatpush.bf16.msrb.mxu3 %v3116_v36 }
 0x6e9   : > { %v1834_v39 = vsub.f32 1.5, %v1833_v38 }
 0x6ea   : > { %v1850_v46 = vadd.f32 %v3243_v15, %v1845_v44  ;;  %2332 = vmatpush.bf16.msra.mxu2 %v3108_v35 }
 0x6eb   : > { %v1835_v23 = vmul.f32 %v3286_v34, %v1834_v39 }
 0x6ed   : > { %v1839_v41 = vsel %vm1838_vm4, %v3286_v34, %v1835_v23 }
 0x6ee   : > { %v1841_v43 = vmul.f32 %v1839_v41, %v4004_v42  ;;  %v3131_v42 = vld [vmem:[%s3701_s17 + $0xb8] sm:$0xff] }
 0x6ef   : > { %2353 = vmatpush.bf16.msra.mxu0 %v3131_v42 }
 0x6f0   : > { %v1846_v45 = vmul.f32 %v3242_v40, %v1841_v43 }
 0x6f2   : > { %v1851_v47 = vadd.f32 %v3243_v15, %v1846_v45 }
 0x6f3   : > { %2354 = vmatpush.bf16.msra.mxu0 %v3130_v50 }
 0x6f4   : > { %v1852_v48 = vpack.c.bf16 %v1851_v47, %v1850_v46 }
 0x6f6   : > { %2030 = vmatmul.bf16.vlgmr.msrb.gmra.mxu2 %v1852_v48  ;;  %2044 = vmatmul.bf16.vlgmr.msra.gmra.mxu3 %v1852_v48 }
 0x6f7   : > { %2058 = vmatmul.bf16.vlgmr.msrb.gmra.mxu0 %v1852_v48  ;;  %2072 = vmatmul.bf16.vlgmr.msra.gmra.mxu1 %v1852_v48 }
 0x6f8   : > { %2355 = vmatpush.bf16.msra.mxu0 %v3129_v54 }
 0x6fc   : > { %2356 = vmatpush.bf16.msra.mxu0 %v3128_v57 }
 0x700   : > { %2357 = vmatpush.bf16.msra.mxu0 %v3127_v60 }
 0x704   : > { %2358 = vmatpush.bf16.msra.mxu0 %v3126_v0 }
 0x708   : > { %2359 = vmatpush.bf16.msra.mxu0 %v3125_v6 }
 0x70c   : > { %2360 = vmatpush.bf16.msra.mxu0 %v3124_v22 }
 0x774   : > { %v2059_v16 = vpop.f32.mrf.mxu0  ;;  %v2073_v18 = vpop.f32.mrf.mxu1 }
 0x775   : > { %v4113_v19 = vadd.f32 %v2059_v16, %v1856_v4  ;;  %v4115_v21 = vadd.f32 %v2073_v18, %v1857_v5 }
 0x777   : > { %v2080_v8 = vmul.f32 -1.702, %v4113_v19  ;;  %v2081_v29 = vmul.f32 -1.702, %v4115_v21 }
 0x779   : > { %v2090_v31 = vmul.f32 1.442695, %v2080_v8  ;;  %v2031_v32 = vpop.f32.mrf.mxu2  ;;  %v2045_v33 = vpop.f32.mrf.mxu3  ;;  %v2092_v51 = vmul.f32 1.442695, %v2081_v29 }
 0x77a   : > { %v4123_v34 = vadd.f32 %v2031_v32, %v1854_v25  ;;  %v4125_v20 = vadd.f32 %v2045_v33, %v1855_v26 }
 0x77b   : > { %3287 = vpow2.f32 %v2090_v31 }
 0x77c   : > { %v2078_v38 = vmul.f32 -1.702, %v4123_v34  ;;  %v2061_v39 = vpop.f32.mrf.mxu0  ;;  %v2075_v10 = vpop.f32.mrf.mxu1  ;;  %v2079_v40 = vmul.f32 -1.702, %v4125_v20  ;;  %3289 = vpow2.f32 %v2092_v51 }
 0x77d   : > { %v2062_v23 = vadd.f32 %v2061_v39, %v1856_v4  ;;  %v2076_v41 = vadd.f32 %v2075_v10, %v1857_v5 }
 0x77e   : > { %v2086_v43 = vmul.f32 1.442695, %v2078_v38  ;;  %v2088_v45 = vmul.f32 1.442695, %v2079_v40 }
 0x77f   : > { %v2084_v44 = vmul.f32 -1.702, %v2062_v23  ;;  %v2085_v15 = vmul.f32 -1.702, %v2076_v41 }
 0x780   : > { %3291 = vpow2.f32 %v2086_v43 }
 0x781   : > { %v2098_v46 = vmul.f32 1.442695, %v2084_v44  ;;  %v2033_v47 = vpop.f32.mrf.mxu2  ;;  %v2047_v48 = vpop.f32.mrf.mxu3  ;;  %v2100_v42 = vmul.f32 1.442695, %v2085_v15 }
 0x782   : > { %v2034_v49 = vadd.f32 %v2033_v47, %v1854_v25  ;;  %v2048_v50 = vadd.f32 %v2047_v48, %v1855_v26  ;;  %v3288_v52 = vpop.eup %3287 }
 0x783   : > { %3293 = vpow2.f32 %v2098_v46  ;;  %v3290_v54 = vpop.eup %3289  ;;  %v2104_v55 = vadd.f32 1.0, %v3288_v52 }
 0x784   : > { %v2082_v9 = vmul.f32 -1.702, %v2034_v49  ;;  %v2083_v53 = vmul.f32 -1.702, %v2048_v50  ;;  %3295 = vpow2.f32 %v2088_v45  ;;  %v2105_v59 = vadd.f32 1.0, %v3290_v54 }
 0x785   : > { %3297 = vpow2.f32 %v2100_v42 }
 0x786   : > { %v2094_v13 = vmul.f32 1.442695, %v2082_v9  ;;  %v3292_v56 = vpop.eup %3291  ;;  %v2096_v57 = vmul.f32 1.442695, %v2083_v53 }
 0x787   : > { %v2102_v7 = vadd.f32 1.0, %v3292_v56 }
 0x788   : > { %3299 = vpow2.f32 %v2094_v13 }
 0x789   : > { %v3294_v58 = vpop.eup %3293  ;;  %3301 = vrcp.f32 %v2104_v55 }
 0x78a   : > { %v2108_v60 = vadd.f32 1.0, %v3294_v58  ;;  %v3296_v62 = vpop.eup %3295  ;;  %3303 = vpow2.f32 %v2096_v57 }
 0x78b   : > { %v3298_v63 = vpop.eup %3297  ;;  %v2103_v1 = vadd.f32 1.0, %v3296_v62 }
 0x78c   : > { %3305 = vrcp.f32 %v2108_v60  ;;  %v2109_v17 = vadd.f32 1.0, %v3298_v63 }
 0x78d   : > { %3307 = vrcp.f32 %v2105_v59 }
 0x78e   : > { %v3300_v0 = vpop.eup %3299  ;;  %3309 = vrcp.f32 %v2102_v7 }
 0x78f   : > { %3311 = vrcp.f32 %v2109_v17  ;;  %v2106_v2 = vadd.f32 1.0, %v3300_v0  ;;  %v3302_v30 = vpop.eup %3301 }
 0x790   : > { %v3304_v3 = vpop.eup %3303  ;;  %v2120_v11 = vmul.f32 %v3302_v30, %v4113_v19 }
 0x791   : > { %3313 = vrcp.f32 %v2106_v2  ;;  %v2107_v5 = vadd.f32 1.0, %v3304_v3 }
 0x792   : > { %v3306_v4 = vpop.eup %3305  ;;  %3315 = vrcp.f32 %v2103_v1 }
 0x793   : > { %v3308_v6 = vpop.eup %3307  ;;  %v2124_v12 = vmul.f32 %v3306_v4, %v2062_v23  ;;  %3317 = vrcp.f32 %v2107_v5 }
 0x794   : > { %v3310_v14 = vpop.eup %3309  ;;  %v2121_v22 = vmul.f32 %v3308_v6, %v4115_v21  ;;  %v3244_v21 = vld [vmem:[%s732_s3] ss:$0 sm:$0xff] }
 0x795   : > { %v3312_v16 = vpop.eup %3311  ;;  %v2128_v18 = vpack.c.bf16 %v2124_v12, %v2120_v11  ;;  %v2118_v8 = vmul.f32 %v3310_v14, %v4123_v34 }
 0x796   : > { %v2125_v24 = vmul.f32 %v3312_v16, %v2076_v41 }
 0x797   : > { %v3314_v25 = vpop.eup %3313  ;;  %2361 = vmatmul.bf16.vlgmr.msra.gmra.mxu0 %v2128_v18 }
 0x798   : > { %v3316_v26 = vpop.eup %3315  ;;  %v2129_v27 = vpack.c.bf16 %v2125_v24, %v2121_v22  ;;  %v2122_v28 = vmul.f32 %v3314_v25, %v2034_v49 }
 0x799   : > { %v3318_v29 = vpop.eup %3317  ;;  %v2119_v19 = vmul.f32 %v3316_v26, %v4125_v20 }
 0x79a   : > { %v2126_v31 = vpack.c.bf16 %v2122_v28, %v2118_v8  ;;  %2375 = vmatmul.bf16.vlgmr.msrb.gmra.mxu1 %v2129_v27  ;;  %v2123_v32 = vmul.f32 %v3318_v29, %v2048_v50 }
 0x79c   : > { %2333 = vmatmul.bf16.vlgmr.msra.gmra.mxu2 %v2126_v31  ;;  %v2127_v33 = vpack.c.bf16 %v2123_v32, %v2119_v19 }
 0x79e   : > { %2347 = vmatmul.bf16.vlgmr.msrb.gmra.mxu3 %v2127_v33 }
 0x814   : > { %v2362_v51 = vpop.f32.mrf.mxu0 }
 0x817   : > { %v2376_v39 = vpop.f32.mrf.mxu1 }
 0x81c   : > { %v2364_v15 = vpop.f32.mrf.mxu0 }
 0x81f   : > { %v2334_v35 = vpop.f32.mrf.mxu2  ;;  %v2378_v46 = vpop.f32.mrf.mxu1 }
 0x820   : > { %v2335_v36 = vadd.f32 %v3244_v21, %v2334_v35 }
 0x821   : > { %v2348_v34 = vpop.f32.mrf.mxu3 }
 0x822   : > { %v2349_v38 = vadd.f32 %v2348_v34, %v2335_v36 }
 0x824   : > { %v2363_v10 = vadd.f32 %v2362_v51, %v2349_v38 }
 0x826   : > { %v2377_v40 = vadd.f32 %v2376_v39, %v2363_v10 }
 0x827   : > { %v2336_v23 = vpop.f32.mrf.mxu2 }
 0x828   : > { %v2337_v41 = vadd.f32 %v3244_v21, %v2336_v23  ;;  %v2381_v20 = vadd.f32 %v2377_v40, %v3987_v61 }
 0x829   : > { %v2350_v43 = vpop.f32.mrf.mxu3 }
 0x82a   : > { %2383 = vst [vmem:[%s4223_s5] sm:$0xff] %v2381_v20  ;;  %v2351_v44 = vadd.f32 %v2350_v43, %v2337_v41 }
 0x82c   : > { %v2365_v45 = vadd.f32 %v2364_v15, %v2351_v44 }
 0x82e   : > { %v2379_v47 = vadd.f32 %v2378_v46, %v2365_v45 }
 0x830   : > { %v2382_v48 = vadd.f32 %v2379_v47, %v3993_v37 }
 0x832   : > { %2384 = vst [vmem:[%s4223_s5 + $0x8] sm:$0xff] %v2382_v48 }
 0x833 PF: > { %s32_s30 = sadd.s32 1, %s3499_s30   ;;  %s4230_s25 = sld [smem:[#allocation12_spill]] }
 0x834   : > { %p29_p1 = scmp.ge.s32.totalorder %s32_s30, 4   ;;  %s4231_s26 = sld [smem:[#allocation13_spill]] }
 0x835   : > { %s4232_s27 = sld [smem:[#allocation16_spill]] }
 0x836   : > { %s4233_s28 = sld [smem:[#allocation14_spill]]  ;;  %31 = sbr.rel (!%p29_p1) target bundleno = 20 (0x14), region = 180 }
 0x837   : > { %s4234_s29 = sld [smem:[#allocation15_spill]] }
 0x83b   :  { %2407 = vsyncpa [#allocation3], 1 }
 0x83c   :  { %2409 = vsyncpa [#allocation3 + $0x1], 1 }
 0x83d   :  { %2410 = vsyncpa [#allocation5], 1 }
 0x83e   :  { %2412 = vsyncpa [#allocation5 + $0x1], 1 }
 0x83f   :  { %2413 = vsyncpa [#allocation8], 1 }
 0x840   :  { %2415 = vsyncpa [#allocation8 + $0x1], 1 }

</bundles_post_ra>
